<compile_context>
chip_gen: v6e
topology: v6e:2x2x1
jax: 0.10.0
libtpu: 0.0.40
codegen_flags: <defaults>
</compile_context>

<pallas_src>
import functools

import jax
import jax.numpy as jnp
from jax.experimental import pallas as pl
from jax.experimental.pallas import tpu as pltpu

_LANE = 128
_MAX_TM = 1024          # per review: 1024-2048; ~7 MiB/step at tm=1024, cp=tk=512
_MAX_TK = 512
_NEG_SLOPE = 0.2
_BN_EPS = 1e-5


# ---------------------------------------------------------------------------
# tiling helpers
# ---------------------------------------------------------------------------
def _round_up(x, m):
    return ((x + m - 1) // m) * m


def _m_tiling(m):
    # 16-row granularity keeps bf16 blocks sublane-pack friendly.
    tm = _MAX_TM if m >= _MAX_TM else _round_up(m, 16)
    return _round_up(m, tm), tm


def _k_tiling(k):
    """Padded K and K tile size.  Prefer a single K step; otherwise a large tile,
    padding K up to a tile multiple rather than degrading to tk=128."""
    kp = _round_up(k, _LANE)
    if kp <= _MAX_TK:
        return kp, kp
    for t in (_MAX_TK, 384, 256):
        if kp % t == 0:
            return kp, t
    return _round_up(kp, _MAX_TK), _MAX_TK


@functools.lru_cache(maxsize=None)
def _vmem_limit_bytes():
    phys = 64 * 1024 * 1024
    try:
        phys = int(pltpu.get_tpu_info().vmem_capacity_bytes)
    except Exception:
        pass
    # ~48 MiB on v7x (64 MiB/TC physical), ~96 MiB on v5e/v6e (128 MiB physical).
    return min((phys * 3) // 4, 112 * 1024 * 1024)


# ---------------------------------------------------------------------------
# Pallas kernel: one (tm, Cp) tile of P @ W with K reduction on grid axis 1.
# Optionally fuses LeakyReLU (conv1) or per-channel sum/sumsq partials (BN convs).
# ---------------------------------------------------------------------------
def _conv_kernel(p_ref, w_ref, o_ref, *rest, activation, emit_stats):
    if emit_stats:
        stats_ref, acc_ref = rest
    else:
        (acc_ref,) = rest
    k = pl.program_id(1)

    @pl.when(k == 0)
    def _():
        acc_ref[...] = jnp.zeros_like(acc_ref)

    acc_ref[...] += jnp.dot(p_ref[...], w_ref[...],
                            preferred_element_type=jnp.float32)

    @pl.when(k == pl.num_programs(1) - 1)
    def _():
        acc = acc_ref[...]
        if activation == "leaky":
            acc = jnp.where(acc >= 0.0, acc, _NEG_SLOPE * acc)
        o_ref[...] = acc.astype(o_ref.dtype)
        if emit_stats:
            # Per-M-tile partial stats: row 0 = sum, row 1 = sum of squares.
            # (Zero-padded M rows contribute exact zeros, so glue can divide by
            # the true count.)  Direct sublane-sliced stores, no iota/where.
            stats_ref[...] = jnp.zeros_like(stats_ref)
            stats_ref[0:1, :] = jnp.sum(acc, axis=0, keepdims=True)
            stats_ref[1:2, :] = jnp.sum(acc * acc, axis=0, keepdims=True)


def conv_matmul(p, w, tm, tk, *, activation=None, emit_stats=False):
    """P (Mp, Kp) bf16 @ W (Kp, Cp) bf16 -> bf16 (Mp, Cp) [+ f32 per-tile stats].

    tn == Cp (full padded Cout): P streams once, grid is (M, K), M is parallel
    (v7x 2-TC friendly), K is the arbitrary reduction axis with a VMEM f32
    accumulator and pl.when init/finalize."""
    mp, kp = p.shape
    _, cp = w.shape
    grid = (mp // tm, kp // tk)
    n_mt = grid[0]

    out_shape = jax.ShapeDtypeStruct((mp, cp), jnp.bfloat16)
    out_specs = pl.BlockSpec((tm, cp), lambda i, k: (i, 0))
    bytes_acc = mp * kp * 2 + kp * cp * 2 + mp * cp * 2
    flops = 2 * mp * kp * cp
    if emit_stats:
        out_shape = (out_shape, jax.ShapeDtypeStruct((n_mt * 8, cp), jnp.float32))
        out_specs = [out_specs, pl.BlockSpec((8, cp), lambda i, k: (i, 0))]
        bytes_acc += n_mt * 8 * cp * 4
        flops += 4 * mp * cp

    return pl.pallas_call(
        functools.partial(_conv_kernel, activation=activation,
                          emit_stats=emit_stats),
        out_shape=out_shape,
        grid=grid,
        in_specs=[pl.BlockSpec((tm, tk), lambda i, k: (i, k)),
                  pl.BlockSpec((tk, cp), lambda i, k: (k, 0))],
        out_specs=out_specs,
        scratch_shapes=[pltpu.VMEM((tm, cp), jnp.float32)],
        compiler_params=pltpu.CompilerParams(
            dimension_semantics=("parallel", "arbitrary"),
            vmem_limit_bytes=_vmem_limit_bytes()),
        cost_estimate=pl.CostEstimate(
            flops=flops, transcendentals=0, bytes_accessed=bytes_acc),
    )(p, w)


# ---------------------------------------------------------------------------
# Glue: im2col, one-time weight prep, per-layer wrapper (plain JAX, XLA-fused)
# ---------------------------------------------------------------------------
def im2col(x, ksize, stride, pad):
    """x: NHWC -> patches (N*OH*OW, ksize*ksize*C), ordering (kh, kw, cin)."""
    n, h, w, c = x.shape
    if pad:
        x = jnp.pad(x, ((0, 0), (pad, pad), (pad, pad), (0, 0)))
    oh = (h + 2 * pad - ksize) // stride + 1
    ow = (w + 2 * pad - ksize) // stride + 1
    cols = []
    for i in range(ksize):
        for j in range(ksize):
            cols.append(x[:, i:i + stride * (oh - 1) + 1:stride,
                             j:j + stride * (ow - 1) + 1:stride, :])
    p = jnp.stack(cols, axis=3)                    # (n, oh, ow, k*k, c)
    p = p.reshape(n * oh * ow, ksize * ksize * c)  # (M, K)
    return p, (n, oh, ow)


def prepare_params(params_pt):
    """One-time weight prep: PyTorch (Cout, Cin, kh, kw) -> bf16 (Kp, Cp), with
    K padded to the chosen K-tile multiple and Cout padded to x128 (lane-dense
    stores).  conv5 stays an unpadded f32 (K, 1) matrix for the plain-dot glue."""
    weights, meta = {}, {}
    for name in ("w1", "w2", "w3", "w4"):
        w_pt = params_pt[name]
        cout, cin, kh, kw = w_pt.shape
        k = kh * kw * cin
        wm = jnp.transpose(w_pt, (2, 3, 1, 0)).reshape(k, cout)
        kp, tk = _k_tiling(k)
        cp = _round_up(cout, _LANE)
        weights[name] = jnp.pad(wm, ((0, kp - k), (0, cp - cout))).astype(jnp.bfloat16)
        meta[name] = (cout, tk)
    w5 = params_pt["w5"]
    cout5, cin5, kh5, kw5 = w5.shape
    weights["w5_mat"] = jnp.transpose(w5, (2, 3, 1, 0)).reshape(
        kh5 * kw5 * cin5, cout5).astype(jnp.float32)
    return weights, meta


def _conv_layer(x, w_padded, layer_meta, ksize, stride, pad,
                *, activation=None, emit_stats=False):
    cout_true, tk = layer_meta
    p, (n, oh, ow) = im2col(x.astype(jnp.bfloat16), ksize, stride, pad)
    m, k = p.shape
    kp = w_padded.shape[0]
    mp, tm = _m_tiling(m)
    p = jnp.pad(p, ((0, mp - m), (0, kp - k)))
    out = conv_matmul(p, w_padded, tm, tk,
                      activation=activation, emit_stats=emit_stats)
    y = out[0] if emit_stats else out
    y = y[:m, :cout_true].reshape(n, oh, ow, cout_true)
    if not emit_stats:
        return y
    stats = out[1]
    st = stats.reshape(-1, 8, stats.shape[-1])[:, :2, :cout_true]   # (mt, 2, C)
    tot = jnp.sum(st, axis=0)                                       # (2, C) f32
    mean = tot[0] / m
    var = jnp.maximum(tot[1] / m - mean * mean, 0.0)  # biased var (PyTorch train mode)
    return y, (mean, var)


def _bn_leaky_apply(y, mean, var):
    """BatchNorm2d (batch stats, default gamma=1/beta=0) + LeakyReLU(0.2).
    Pure per-channel elementwise math; XLA fuses it into the next layer's im2col
    producer, so the normalized activation never makes its own HBM round trip."""
    inv_std = jax.lax.rsqrt(var + _BN_EPS)
    z = (y.astype(jnp.float32) - mean) * inv_std
    z = jnp.where(z >= 0.0, z, _NEG_SLOPE * z)
    return z.astype(jnp.bfloat16)


# ---------------------------------------------------------------------------
# Discriminator forward
# ---------------------------------------------------------------------------
def discriminator_forward(x_nchw, weights, *, meta):
    x = jnp.transpose(x_nchw, (0, 2, 3, 1))                           # NCHW -> NHWC
    # conv1 (nc -> ndf, 4/2/1) + LeakyReLU(0.2) fused in the matmul epilogue.
    x = _conv_layer(x, weights["w1"], meta["w1"], 4, 2, 1, activation="leaky")
    # conv2..conv4 (4/2/1): conv with fused per-channel sum/sumsq partials, then
    # BatchNorm(batch stats) + LeakyReLU folded into the next layer's input path.
    for name in ("w2", "w3", "w4"):
        x, (mean, var) = _conv_layer(x, weights[name], meta[name], 4, 2, 1,
                                     emit_stats=True)
        x = _bn_leaky_apply(x, mean, var)
    # conv5 (ndf*8 -> 1, 4/1/0) + Sigmoid: M=N, Cout=1 -> plain dot in glue.
    p5, _ = im2col(x.astype(jnp.float32), 4, 1, 0)
    y = jax.nn.sigmoid(p5 @ weights["w5_mat"])
    return y.reshape(-1)                                # output.view(-1,1).squeeze(1)


# ---------------------------------------------------------------------------
if __name__ == "__main__":
    # DCGAN discriminator needs 64x64 spatial input for the final 4x4/s1/p0 conv
    # to reduce to 1x1; keep batch / channel counts small.
    N, nc, ndf, S = 2, 3, 8, 64

    key = jax.random.PRNGKey(0)
    kx, k1, k2, k3, k4, k5 = jax.random.split(key, 6)
    x = jax.random.normal(kx, (N, nc, S, S), dtype=jnp.float32)

    params_pt = {   # PyTorch conv layout (Cout, Cin, kh, kw), bias=False
        "w1": 0.02 * jax.random.normal(k1, (ndf, nc, 4, 4), jnp.float32),
        "w2": 0.02 * jax.random.normal(k2, (ndf * 2, ndf, 4, 4), jnp.float32),
        "w3": 0.02 * jax.random.normal(k3, (ndf * 4, ndf * 2, 4, 4), jnp.float32),
        "w4": 0.02 * jax.random.normal(k4, (ndf * 8, ndf * 4, 4, 4), jnp.float32),
        "w5": 0.02 * jax.random.normal(k5, (1, ndf * 8, 4, 4), jnp.float32),
    }

    weights, meta = prepare_params(params_pt)          # hoisted one-time weight prep
    fwd = jax.jit(functools.partial(discriminator_forward, meta=meta))
    out = jax.block_until_ready(fwd(x, weights))

    assert out.shape == (N,), out.shape
    assert bool(jnp.all(jnp.isfinite(out)))
    assert bool(jnp.all((out >= 0.0) & (out <= 1.0)))  # sigmoid range
    print("KERNEL_OK")
</pallas_src>

<mosaic_0001>
module attributes {stable_mosaic.version = 11 : i64} {
  func.func @_conv_kernel(%arg0: i32, %arg1: i32, %arg2: memref<1024x128xbf16, #tpu.memory_space<vmem>>, %arg3: memref<128x128xbf16, #tpu.memory_space<vmem>>, %arg4: memref<1024x128xbf16, #tpu.memory_space<vmem>>, %arg5: memref<1024x128xf32, #tpu.memory_space<vmem>>) attributes {dimension_semantics = [#tpu.dimension_semantics<parallel>, #tpu.dimension_semantics<arbitrary>], iteration_bounds = array<i64: 2, 1>, scalar_prefetch = 0 : i64, scratch_operands = 1 : i64, tpu.core_type = #tpu.core_type<tc>, window_params = [{transform_indices = @transform_0, window_bounds = array<i64: 1024, 128>}, {transform_indices = @transform_1, window_bounds = array<i64: 128, 128>}, {transform_indices = @transform_2, window_bounds = array<i64: 1024, 128>}]} {
    %c0_i32 = arith.constant 0 : i32
    %0 = arith.cmpi eq, %arg1, %c0_i32 : i32
    %1 = arith.extui %0 : i1 to i32
    %c0_i32_0 = arith.constant 0 : i32
    %2 = arith.cmpi ne, %1, %c0_i32_0 : i32
    scf.if %2 {
      %cst_10 = arith.constant 0.000000e+00 : f32
      %12 = vector.broadcast %cst_10 : f32 to vector<1024x128xf32>
      %c0_11 = arith.constant 0 : index
      %c0_12 = arith.constant 0 : index
      %13 = vector.load %arg5[%c0_11, %c0_12] : memref<1024x128xf32, #tpu.memory_space<vmem>>, vector<1024x128xf32>
      tpu.vector_store %arg5[%c0_11, %c0_12], %12 {strides = array<i32>} : memref<1024x128xf32, #tpu.memory_space<vmem>>, vector<1024x128xf32>,
    } else {
    }
    %c0 = arith.constant 0 : index
    %c0_1 = arith.constant 0 : index
    %3 = vector.load %arg5[%c0, %c0_1] : memref<1024x128xf32, #tpu.memory_space<vmem>>, vector<1024x128xf32>
    %c0_2 = arith.constant 0 : index
    %c0_3 = arith.constant 0 : index
    %4 = vector.load %arg2[%c0_2, %c0_3] : memref<1024x128xbf16, #tpu.memory_space<vmem>>, vector<1024x128xbf16>
    %c0_4 = arith.constant 0 : index
    %c0_5 = arith.constant 0 : index
    %5 = vector.load %arg3[%c0_4, %c0_5] : memref<128x128xbf16, #tpu.memory_space<vmem>>, vector<128x128xbf16>
    %cst = arith.constant dense<0.000000e+00> : vector<1024x128xf32>
    %6 = tpu.matmul %4, %5, %cst {dimension_numbers = #tpu.dot_dimension_numbers<[1], [0], [0], [1], [0, 0, 1, 1], [], []>} : vector<1024x128xbf16>, vector<128x128xbf16>, vector<1024x128xf32> -> vector<1024x128xf32>
    %7 = arith.addf %3, %6 : vector<1024x128xf32>
    %c0_6 = arith.constant 0 : index
    %c0_7 = arith.constant 0 : index
    %8 = vector.load %arg5[%c0_6, %c0_7] : memref<1024x128xf32, #tpu.memory_space<vmem>>, vector<1024x128xf32>
    tpu.vector_store %arg5[%c0_6, %c0_7], %7 {strides = array<i32>} : memref<1024x128xf32, #tpu.memory_space<vmem>>, vector<1024x128xf32>,
    %c0_i32_8 = arith.constant 0 : i32
    %9 = arith.cmpi eq, %arg1, %c0_i32_8 : i32
    %10 = arith.extui %9 : i1 to i32
    %c0_i32_9 = arith.constant 0 : i32
    %11 = arith.cmpi ne, %10, %c0_i32_9 : i32
    scf.if %11 {
      %c0_10 = arith.constant 0 : index
      %c0_11 = arith.constant 0 : index
      %12 = vector.load %arg5[%c0_10, %c0_11] : memref<1024x128xf32, #tpu.memory_space<vmem>>, vector<1024x128xf32>
      %cst_12 = arith.constant 0.000000e+00 : f32
      %13 = vector.broadcast %cst_12 : f32 to vector<1024x128xf32>
      %14 = arith.cmpf oge, %12, %13 : vector<1024x128xf32>
      %cst_13 = arith.constant 2.000000e-01 : f32
      %15 = vector.broadcast %cst_13 : f32 to vector<1024x128xf32>
      %16 = arith.mulf %15, %12 : vector<1024x128xf32>
      %17 = arith.select %14, %12, %16 : vector<1024x128xi1>, vector<1024x128xf32>
      %18 = arith.truncf %17 : vector<1024x128xf32> to vector<1024x128xbf16>
      %c0_14 = arith.constant 0 : index
      %c0_15 = arith.constant 0 : index
      %19 = vector.load %arg4[%c0_14, %c0_15] : memref<1024x128xbf16, #tpu.memory_space<vmem>>, vector<1024x128xbf16>
      tpu.vector_store %arg4[%c0_14, %c0_15], %18 {strides = array<i32>} : memref<1024x128xbf16, #tpu.memory_space<vmem>>, vector<1024x128xbf16>,
    } else {
    }
    return
  }
  func.func @transform_0(%arg0: i32, %arg1: i32) -> (i32, i32) {
    %c0_i32 = arith.constant 0 : i32
    return %arg0, %arg1 : i32, i32
  }
  func.func @transform_1(%arg0: i32, %arg1: i32) -> (i32, i32) {
    %c0_i32 = arith.constant 0 : i32
    %c0_i32_0 = arith.constant 0 : i32
    return %arg1, %c0_i32 : i32, i32
  }
  func.func @transform_2(%arg0: i32, %arg1: i32) -> (i32, i32) {
    %c0_i32 = arith.constant 0 : i32
    %c0_i32_0 = arith.constant 0 : i32
    return %arg0, %c0_i32 : i32, i32
  }
}

module attributes {stable_mosaic.version = 11 : i64} {
  func.func @_conv_kernel(%arg0: i32, %arg1: i32, %arg2: memref<512x128xbf16, #tpu.memory_space<vmem>>, %arg3: memref<128x128xbf16, #tpu.memory_space<vmem>>, %arg4: memref<512x128xbf16, #tpu.memory_space<vmem>>, %arg5: memref<8x128xf32, #tpu.memory_space<vmem>>, %arg6: memref<512x128xf32, #tpu.memory_space<vmem>>) attributes {dimension_semantics = [#tpu.dimension_semantics<parallel>, #tpu.dimension_semantics<arbitrary>], iteration_bounds = array<i64: 1, 1>, scalar_prefetch = 0 : i64, scratch_operands = 1 : i64, tpu.core_type = #tpu.core_type<tc>, window_params = [{transform_indices = @transform_0, window_bounds = array<i64: 512, 128>}, {transform_indices = @transform_1, window_bounds = array<i64: 128, 128>}, {transform_indices = @transform_2, window_bounds = array<i64: 512, 128>}, {transform_indices = @transform_3, window_bounds = array<i64: 8, 128>}]} {
    %c0_i32 = arith.constant 0 : i32
    %0 = arith.cmpi eq, %arg1, %c0_i32 : i32
    %1 = arith.extui %0 : i1 to i32
    %c0_i32_0 = arith.constant 0 : i32
    %2 = arith.cmpi ne, %1, %c0_i32_0 : i32
    scf.if %2 {
      %cst_10 = arith.constant 0.000000e+00 : f32
      %12 = vector.broadcast %cst_10 : f32 to vector<512x128xf32>
      %c0_11 = arith.constant 0 : index
      %c0_12 = arith.constant 0 : index
      %13 = vector.load %arg6[%c0_11, %c0_12] : memref<512x128xf32, #tpu.memory_space<vmem>>, vector<512x128xf32>
      tpu.vector_store %arg6[%c0_11, %c0_12], %12 {strides = array<i32>} : memref<512x128xf32, #tpu.memory_space<vmem>>, vector<512x128xf32>,
    } else {
    }
    %c0 = arith.constant 0 : index
    %c0_1 = arith.constant 0 : index
    %3 = vector.load %arg6[%c0, %c0_1] : memref<512x128xf32, #tpu.memory_space<vmem>>, vector<512x128xf32>
    %c0_2 = arith.constant 0 : index
    %c0_3 = arith.constant 0 : index
    %4 = vector.load %arg2[%c0_2, %c0_3] : memref<512x128xbf16, #tpu.memory_space<vmem>>, vector<512x128xbf16>
    %c0_4 = arith.constant 0 : index
    %c0_5 = arith.constant 0 : index
    %5 = vector.load %arg3[%c0_4, %c0_5] : memref<128x128xbf16, #tpu.memory_space<vmem>>, vector<128x128xbf16>
    %cst = arith.constant dense<0.000000e+00> : vector<512x128xf32>
    %6 = tpu.matmul %4, %5, %cst {dimension_numbers = #tpu.dot_dimension_numbers<[1], [0], [0], [1], [0, 0, 1, 1], [], []>} : vector<512x128xbf16>, vector<128x128xbf16>, vector<512x128xf32> -> vector<512x128xf32>
    %7 = arith.addf %3, %6 : vector<512x128xf32>
    %c0_6 = arith.constant 0 : index
    %c0_7 = arith.constant 0 : index
    %8 = vector.load %arg6[%c0_6, %c0_7] : memref<512x128xf32, #tpu.memory_space<vmem>>, vector<512x128xf32>
    tpu.vector_store %arg6[%c0_6, %c0_7], %7 {strides = array<i32>} : memref<512x128xf32, #tpu.memory_space<vmem>>, vector<512x128xf32>,
    %c0_i32_8 = arith.constant 0 : i32
    %9 = arith.cmpi eq, %arg1, %c0_i32_8 : i32
    %10 = arith.extui %9 : i1 to i32
    %c0_i32_9 = arith.constant 0 : i32
    %11 = arith.cmpi ne, %10, %c0_i32_9 : i32
    scf.if %11 {
      %c0_10 = arith.constant 0 : index
      %c0_11 = arith.constant 0 : index
      %12 = vector.load %arg6[%c0_10, %c0_11] : memref<512x128xf32, #tpu.memory_space<vmem>>, vector<512x128xf32>
      %13 = arith.truncf %12 : vector<512x128xf32> to vector<512x128xbf16>
      %c0_12 = arith.constant 0 : index
      %c0_13 = arith.constant 0 : index
      %14 = vector.load %arg4[%c0_12, %c0_13] : memref<512x128xbf16, #tpu.memory_space<vmem>>, vector<512x128xbf16>
      tpu.vector_store %arg4[%c0_12, %c0_13], %13 {strides = array<i32>} : memref<512x128xbf16, #tpu.memory_space<vmem>>, vector<512x128xbf16>,
      %cst_14 = arith.constant 0.000000e+00 : f32
      %15 = vector.broadcast %cst_14 : f32 to vector<8x128xf32>
      %c0_15 = arith.constant 0 : index
      %c0_16 = arith.constant 0 : index
      %16 = vector.load %arg5[%c0_15, %c0_16] : memref<8x128xf32, #tpu.memory_space<vmem>>, vector<8x128xf32>
      tpu.vector_store %arg5[%c0_15, %c0_16], %15 {strides = array<i32>} : memref<8x128xf32, #tpu.memory_space<vmem>>, vector<8x128xf32>,
      %cst_17 = arith.constant dense<0.000000e+00> : vector<128xf32>
      %17 = vector.multi_reduction <add>, %12, %cst_17 [0] : vector<512x128xf32> to vector<128xf32>
      %18 = vector.shape_cast %17 : vector<128xf32> to vector<1x128xf32>
      %c0_18 = arith.constant 0 : index
      %c0_19 = arith.constant 0 : index
      %19 = vector.load %arg5[%c0_18, %c0_19] : memref<8x128xf32, #tpu.memory_space<vmem>>, vector<1x128xf32>
      tpu.vector_store %arg5[%c0_18, %c0_19], %18 {strides = array<i32>} : memref<8x128xf32, #tpu.memory_space<vmem>>, vector<1x128xf32>,
      %20 = arith.mulf %12, %12 : vector<512x128xf32>
      %cst_20 = arith.constant dense<0.000000e+00> : vector<128xf32>
      %21 = vector.multi_reduction <add>, %20, %cst_20 [0] : vector<512x128xf32> to vector<128xf32>
      %22 = vector.shape_cast %21 : vector<128xf32> to vector<1x128xf32>
      %c1 = arith.constant 1 : index
      %c0_21 = arith.constant 0 : index
      %23 = vector.load %arg5[%c1, %c0_21] : memref<8x128xf32, #tpu.memory_space<vmem>>, vector<1x128xf32>
      tpu.vector_store %arg5[%c1, %c0_21], %22 {strides = array<i32>} : memref<8x128xf32, #tpu.memory_space<vmem>>, vector<1x128xf32>,
    } else {
    }
    return
  }
  func.func @transform_0(%arg0: i32, %arg1: i32) -> (i32, i32) {
    %c0_i32 = arith.constant 0 : i32
    return %arg0, %arg1 : i32, i32
  }
  func.func @transform_1(%arg0: i32, %arg1: i32) -> (i32, i32) {
    %c0_i32 = arith.constant 0 : i32
    %c0_i32_0 = arith.constant 0 : i32
    return %arg1, %c0_i32 : i32, i32
  }
  func.func @transform_2(%arg0: i32, %arg1: i32) -> (i32, i32) {
    %c0_i32 = arith.constant 0 : i32
    %c0_i32_0 = arith.constant 0 : i32
    return %arg0, %c0_i32 : i32, i32
  }
  func.func @transform_3(%arg0: i32, %arg1: i32) -> (i32, i32) {
    %c0_i32 = arith.constant 0 : i32
    %c0_i32_0 = arith.constant 0 : i32
    return %arg0, %c0_i32 : i32, i32
  }
}

module attributes {stable_mosaic.version = 11 : i64} {
  func.func @_conv_kernel(%arg0: i32, %arg1: i32, %arg2: memref<128x256xbf16, #tpu.memory_space<vmem>>, %arg3: memref<256x128xbf16, #tpu.memory_space<vmem>>, %arg4: memref<128x128xbf16, #tpu.memory_space<vmem>>, %arg5: memref<8x128xf32, #tpu.memory_space<vmem>>, %arg6: memref<128x128xf32, #tpu.memory_space<vmem>>) attributes {dimension_semantics = [#tpu.dimension_semantics<parallel>, #tpu.dimension_semantics<arbitrary>], iteration_bounds = array<i64: 1, 1>, scalar_prefetch = 0 : i64, scratch_operands = 1 : i64, tpu.core_type = #tpu.core_type<tc>, window_params = [{transform_indices = @transform_0, window_bounds = array<i64: 128, 256>}, {transform_indices = @transform_1, window_bounds = array<i64: 256, 128>}, {transform_indices = @transform_2, window_bounds = array<i64: 128, 128>}, {transform_indices = @transform_3, window_bounds = array<i64: 8, 128>}]} {
    %c0_i32 = arith.constant 0 : i32
    %0 = arith.cmpi eq, %arg1, %c0_i32 : i32
    %1 = arith.extui %0 : i1 to i32
    %c0_i32_0 = arith.constant 0 : i32
    %2 = arith.cmpi ne, %1, %c0_i32_0 : i32
    scf.if %2 {
      %cst_10 = arith.constant 0.000000e+00 : f32
      %12 = vector.broadcast %cst_10 : f32 to vector<128x128xf32>
      %c0_11 = arith.constant 0 : index
      %c0_12 = arith.constant 0 : index
      %13 = vector.load %arg6[%c0_11, %c0_12] : memref<128x128xf32, #tpu.memory_space<vmem>>, vector<128x128xf32>
      tpu.vector_store %arg6[%c0_11, %c0_12], %12 {strides = array<i32>} : memref<128x128xf32, #tpu.memory_space<vmem>>, vector<128x128xf32>,
    } else {
    }
    %c0 = arith.constant 0 : index
    %c0_1 = arith.constant 0 : index
    %3 = vector.load %arg6[%c0, %c0_1] : memref<128x128xf32, #tpu.memory_space<vmem>>, vector<128x128xf32>
    %c0_2 = arith.constant 0 : index
    %c0_3 = arith.constant 0 : index
    %4 = vector.load %arg2[%c0_2, %c0_3] : memref<128x256xbf16, #tpu.memory_space<vmem>>, vector<128x256xbf16>
    %c0_4 = arith.constant 0 : index
    %c0_5 = arith.constant 0 : index
    %5 = vector.load %arg3[%c0_4, %c0_5] : memref<256x128xbf16, #tpu.memory_space<vmem>>, vector<256x128xbf16>
    %cst = arith.constant dense<0.000000e+00> : vector<128x128xf32>
    %6 = tpu.matmul %4, %5, %cst {dimension_numbers = #tpu.dot_dimension_numbers<[1], [0], [0], [1], [0, 0, 1, 1], [], []>} : vector<128x256xbf16>, vector<256x128xbf16>, vector<128x128xf32> -> vector<128x128xf32>
    %7 = arith.addf %3, %6 : vector<128x128xf32>
    %c0_6 = arith.constant 0 : index
    %c0_7 = arith.constant 0 : index
    %8 = vector.load %arg6[%c0_6, %c0_7] : memref<128x128xf32, #tpu.memory_space<vmem>>, vector<128x128xf32>
    tpu.vector_store %arg6[%c0_6, %c0_7], %7 {strides = array<i32>} : memref<128x128xf32, #tpu.memory_space<vmem>>, vector<128x128xf32>,
    %c0_i32_8 = arith.constant 0 : i32
    %9 = arith.cmpi eq, %arg1, %c0_i32_8 : i32
    %10 = arith.extui %9 : i1 to i32
    %c0_i32_9 = arith.constant 0 : i32
    %11 = arith.cmpi ne, %10, %c0_i32_9 : i32
    scf.if %11 {
      %c0_10 = arith.constant 0 : index
      %c0_11 = arith.constant 0 : index
      %12 = vector.load %arg6[%c0_10, %c0_11] : memref<128x128xf32, #tpu.memory_space<vmem>>, vector<128x128xf32>
      %13 = arith.truncf %12 : vector<128x128xf32> to vector<128x128xbf16>
      %c0_12 = arith.constant 0 : index
      %c0_13 = arith.constant 0 : index
      %14 = vector.load %arg4[%c0_12, %c0_13] : memref<128x128xbf16, #tpu.memory_space<vmem>>, vector<128x128xbf16>
      tpu.vector_store %arg4[%c0_12, %c0_13], %13 {strides = array<i32>} : memref<128x128xbf16, #tpu.memory_space<vmem>>, vector<128x128xbf16>,
      %cst_14 = arith.constant 0.000000e+00 : f32
      %15 = vector.broadcast %cst_14 : f32 to vector<8x128xf32>
      %c0_15 = arith.constant 0 : index
      %c0_16 = arith.constant 0 : index
      %16 = vector.load %arg5[%c0_15, %c0_16] : memref<8x128xf32, #tpu.memory_space<vmem>>, vector<8x128xf32>
      tpu.vector_store %arg5[%c0_15, %c0_16], %15 {strides = array<i32>} : memref<8x128xf32, #tpu.memory_space<vmem>>, vector<8x128xf32>,
      %cst_17 = arith.constant dense<0.000000e+00> : vector<128xf32>
      %17 = vector.multi_reduction <add>, %12, %cst_17 [0] : vector<128x128xf32> to vector<128xf32>
      %18 = vector.shape_cast %17 : vector<128xf32> to vector<1x128xf32>
      %c0_18 = arith.constant 0 : index
      %c0_19 = arith.constant 0 : index
      %19 = vector.load %arg5[%c0_18, %c0_19] : memref<8x128xf32, #tpu.memory_space<vmem>>, vector<1x128xf32>
      tpu.vector_store %arg5[%c0_18, %c0_19], %18 {strides = array<i32>} : memref<8x128xf32, #tpu.memory_space<vmem>>, vector<1x128xf32>,
      %20 = arith.mulf %12, %12 : vector<128x128xf32>
      %cst_20 = arith.constant dense<0.000000e+00> : vector<128xf32>
      %21 = vector.multi_reduction <add>, %20, %cst_20 [0] : vector<128x128xf32> to vector<128xf32>
      %22 = vector.shape_cast %21 : vector<128xf32> to vector<1x128xf32>
      %c1 = arith.constant 1 : index
      %c0_21 = arith.constant 0 : index
      %23 = vector.load %arg5[%c1, %c0_21] : memref<8x128xf32, #tpu.memory_space<vmem>>, vector<1x128xf32>
      tpu.vector_store %arg5[%c1, %c0_21], %22 {strides = array<i32>} : memref<8x128xf32, #tpu.memory_space<vmem>>, vector<1x128xf32>,
    } else {
    }
    return
  }
  func.func @transform_0(%arg0: i32, %arg1: i32) -> (i32, i32) {
    %c0_i32 = arith.constant 0 : i32
    return %arg0, %arg1 : i32, i32
  }
  func.func @transform_1(%arg0: i32, %arg1: i32) -> (i32, i32) {
    %c0_i32 = arith.constant 0 : i32
    %c0_i32_0 = arith.constant 0 : i32
    return %arg1, %c0_i32 : i32, i32
  }
  func.func @transform_2(%arg0: i32, %arg1: i32) -> (i32, i32) {
    %c0_i32 = arith.constant 0 : i32
    %c0_i32_0 = arith.constant 0 : i32
    return %arg0, %c0_i32 : i32, i32
  }
  func.func @transform_3(%arg0: i32, %arg1: i32) -> (i32, i32) {
    %c0_i32 = arith.constant 0 : i32
    %c0_i32_0 = arith.constant 0 : i32
    return %arg0, %c0_i32 : i32, i32
  }
}

module attributes {stable_mosaic.version = 11 : i64} {
  func.func @_conv_kernel(%arg0: i32, %arg1: i32, %arg2: memref<32x512xbf16, #tpu.memory_space<vmem>>, %arg3: memref<512x128xbf16, #tpu.memory_space<vmem>>, %arg4: memref<32x128xbf16, #tpu.memory_space<vmem>>, %arg5: memref<8x128xf32, #tpu.memory_space<vmem>>, %arg6: memref<32x128xf32, #tpu.memory_space<vmem>>) attributes {dimension_semantics = [#tpu.dimension_semantics<parallel>, #tpu.dimension_semantics<arbitrary>], iteration_bounds = array<i64: 1, 1>, scalar_prefetch = 0 : i64, scratch_operands = 1 : i64, tpu.core_type = #tpu.core_type<tc>, window_params = [{transform_indices = @transform_0, window_bounds = array<i64: 32, 512>}, {transform_indices = @transform_1, window_bounds = array<i64: 512, 128>}, {transform_indices = @transform_2, window_bounds = array<i64: 32, 128>}, {transform_indices = @transform_3, window_bounds = array<i64: 8, 128>}]} {
    %c0_i32 = arith.constant 0 : i32
    %0 = arith.cmpi eq, %arg1, %c0_i32 : i32
    %1 = arith.extui %0 : i1 to i32
    %c0_i32_0 = arith.constant 0 : i32
    %2 = arith.cmpi ne, %1, %c0_i32_0 : i32
    scf.if %2 {
      %cst_10 = arith.constant 0.000000e+00 : f32
      %12 = vector.broadcast %cst_10 : f32 to vector<32x128xf32>
      %c0_11 = arith.constant 0 : index
      %c0_12 = arith.constant 0 : index
      %13 = vector.load %arg6[%c0_11, %c0_12] : memref<32x128xf32, #tpu.memory_space<vmem>>, vector<32x128xf32>
      tpu.vector_store %arg6[%c0_11, %c0_12], %12 {strides = array<i32>} : memref<32x128xf32, #tpu.memory_space<vmem>>, vector<32x128xf32>,
    } else {
    }
    %c0 = arith.constant 0 : index
    %c0_1 = arith.constant 0 : index
    %3 = vector.load %arg6[%c0, %c0_1] : memref<32x128xf32, #tpu.memory_space<vmem>>, vector<32x128xf32>
    %c0_2 = arith.constant 0 : index
    %c0_3 = arith.constant 0 : index
    %4 = vector.load %arg2[%c0_2, %c0_3] : memref<32x512xbf16, #tpu.memory_space<vmem>>, vector<32x512xbf16>
    %c0_4 = arith.constant 0 : index
    %c0_5 = arith.constant 0 : index
    %5 = vector.load %arg3[%c0_4, %c0_5] : memref<512x128xbf16, #tpu.memory_space<vmem>>, vector<512x128xbf16>
    %cst = arith.constant dense<0.000000e+00> : vector<32x128xf32>
    %6 = tpu.matmul %4, %5, %cst {dimension_numbers = #tpu.dot_dimension_numbers<[1], [0], [0], [1], [0, 0, 1, 1], [], []>} : vector<32x512xbf16>, vector<512x128xbf16>, vector<32x128xf32> -> vector<32x128xf32>
    %7 = arith.addf %3, %6 : vector<32x128xf32>
    %c0_6 = arith.constant 0 : index
    %c0_7 = arith.constant 0 : index
    %8 = vector.load %arg6[%c0_6, %c0_7] : memref<32x128xf32, #tpu.memory_space<vmem>>, vector<32x128xf32>
    tpu.vector_store %arg6[%c0_6, %c0_7], %7 {strides = array<i32>} : memref<32x128xf32, #tpu.memory_space<vmem>>, vector<32x128xf32>,
    %c0_i32_8 = arith.constant 0 : i32
    %9 = arith.cmpi eq, %arg1, %c0_i32_8 : i32
    %10 = arith.extui %9 : i1 to i32
    %c0_i32_9 = arith.constant 0 : i32
    %11 = arith.cmpi ne, %10, %c0_i32_9 : i32
    scf.if %11 {
      %c0_10 = arith.constant 0 : index
      %c0_11 = arith.constant 0 : index
      %12 = vector.load %arg6[%c0_10, %c0_11] : memref<32x128xf32, #tpu.memory_space<vmem>>, vector<32x128xf32>
      %13 = arith.truncf %12 : vector<32x128xf32> to vector<32x128xbf16>
      %c0_12 = arith.constant 0 : index
      %c0_13 = arith.constant 0 : index
      %14 = vector.load %arg4[%c0_12, %c0_13] : memref<32x128xbf16, #tpu.memory_space<vmem>>, vector<32x128xbf16>
      tpu.vector_store %arg4[%c0_12, %c0_13], %13 {strides = array<i32>} : memref<32x128xbf16, #tpu.memory_space<vmem>>, vector<32x128xbf16>,
      %cst_14 = arith.constant 0.000000e+00 : f32
      %15 = vector.broadcast %cst_14 : f32 to vector<8x128xf32>
      %c0_15 = arith.constant 0 : index
      %c0_16 = arith.constant 0 : index
      %16 = vector.load %arg5[%c0_15, %c0_16] : memref<8x128xf32, #tpu.memory_space<vmem>>, vector<8x128xf32>
      tpu.vector_store %arg5[%c0_15, %c0_16], %15 {strides = array<i32>} : memref<8x128xf32, #tpu.memory_space<vmem>>, vector<8x128xf32>,
      %cst_17 = arith.constant dense<0.000000e+00> : vector<128xf32>
      %17 = vector.multi_reduction <add>, %12, %cst_17 [0] : vector<32x128xf32> to vector<128xf32>
      %18 = vector.shape_cast %17 : vector<128xf32> to vector<1x128xf32>
      %c0_18 = arith.constant 0 : index
      %c0_19 = arith.constant 0 : index
      %19 = vector.load %arg5[%c0_18, %c0_19] : memref<8x128xf32, #tpu.memory_space<vmem>>, vector<1x128xf32>
      tpu.vector_store %arg5[%c0_18, %c0_19], %18 {strides = array<i32>} : memref<8x128xf32, #tpu.memory_space<vmem>>, vector<1x128xf32>,
      %20 = arith.mulf %12, %12 : vector<32x128xf32>
      %cst_20 = arith.constant dense<0.000000e+00> : vector<128xf32>
      %21 = vector.multi_reduction <add>, %20, %cst_20 [0] : vector<32x128xf32> to vector<128xf32>
      %22 = vector.shape_cast %21 : vector<128xf32> to vector<1x128xf32>
      %c1 = arith.constant 1 : index
      %c0_21 = arith.constant 0 : index
      %23 = vector.load %arg5[%c1, %c0_21] : memref<8x128xf32, #tpu.memory_space<vmem>>, vector<1x128xf32>
      tpu.vector_store %arg5[%c1, %c0_21], %22 {strides = array<i32>} : memref<8x128xf32, #tpu.memory_space<vmem>>, vector<1x128xf32>,
    } else {
    }
    return
  }
  func.func @transform_0(%arg0: i32, %arg1: i32) -> (i32, i32) {
    %c0_i32 = arith.constant 0 : i32
    return %arg0, %arg1 : i32, i32
  }
  func.func @transform_1(%arg0: i32, %arg1: i32) -> (i32, i32) {
    %c0_i32 = arith.constant 0 : i32
    %c0_i32_0 = arith.constant 0 : i32
    return %arg1, %c0_i32 : i32, i32
  }
  func.func @transform_2(%arg0: i32, %arg1: i32) -> (i32, i32) {
    %c0_i32 = arith.constant 0 : i32
    %c0_i32_0 = arith.constant 0 : i32
    return %arg0, %c0_i32 : i32, i32
  }
  func.func @transform_3(%arg0: i32, %arg1: i32) -> (i32, i32) {
    %c0_i32 = arith.constant 0 : i32
    %c0_i32_0 = arith.constant 0 : i32
    return %arg0, %c0_i32 : i32, i32
  }
}

</mosaic_0001>

<bundles_post_ra>
// kernel: discriminator_forward.4
= control target key start
LH: loop header
LB: loop body
LE: loop exit
PB: predicated region body
PF: predicated region fallthrough
CT: control target
= control target key end

     0   :  { %s4158_s9 = smov 0   ;;  %s4160_s10 = smov 0   ;;  %s4371_s0 = inlined_call_operand.vmem [shape: bf16[2048,128], index: 0, kind: input, shape index: {}]   ;;  %s4372_s1 = inlined_call_operand.vmem [shape: bf16[128,128], index: 1, kind: input, shape index: {}]   ;;  %s4373_s2 = inlined_call_operand.vmem [shape: bf16[2048,128], index: 2, kind: output, shape index: {}]  }
   0x1   :  { %s4162_s11 = smov 0  }
   0x2 LB: > { %s24_s12 = sadd.s32 1, %s4137_s10  ;;  %p3073_p0 = scmp.ge.s32.totalorder %s4141_s11, 1  ;;  %s4141_s11 = sphi %s4162_s11, %s12_s11   ;;  %s4137_s10 = sphi %s4160_s10, %s4375_s10   ;;  %s4133_s9 = sphi %s4158_s9, %s4374_s9  }
   0x3   : > { %p26_p1 = scmp.ge.s32.totalorder %s24_s12, 2  ;;  %p141_p2 = scmp.lt.s32.totalorder %s4141_s11, 3 }
   0x5   : > { %s4377_s12 = smov (%p26_p1, %s24_s12), 0  ;;  %p142_p3 = pnand %p3073_p0, %p141_p2 }
   0x6   : > { %s3074_s15 = sshll.u32 (!%p142_p3), %s4133_s9, 7 }
   0x7   : > { %145 = sbr.rel (%p142_p3) target bundleno = 371 (0x173), region = 28  ;;  %p172_p4 = scmp.lt.s32.totalorder (!%p142_p3), %s3074_s15, 255 }
   0xc   : > { %v4047_v0 = vld [vmem:[%s4372_s1 + $0x38] sm:$0xff]   ;;  %v4048_v1 = vld [vmem:[%s4372_s1 + $0x30] sm:$0xff]   ;;  %s4379_s15 = smov (!%p172_p4, %s3074_s15), 255  ;;  %v4049_v2 = vld [vmem:[%s4372_s1 + $0x28] sm:$0xff]  }
   0xd   : > { %3863 = vmatprep.subr.bf16.mxu0 %v4047_v0  ;;  %4007 = vmatprep.subr.bf16.mxu1 %v4047_v0  ;;  %s3075_s20 = sshll.u32 %s4379_s15, 2  ;;  %v4050_v3 = vld [vmem:[%s4372_s1 + $0x20] sm:$0xff]   ;;  %v4051_v6 = vld [vmem:[%s4372_s1 + $0x18] sm:$0xff]   ;;  %v4052_v7 = vld [vmem:[%s4372_s1 + $0x10] sm:$0xff]  }
   0xe   : > { %3864 = vmatpush3.bf16.msra.mxu0 %v4047_v0  ;;  %4015 = vmatpush3.bf16.msra.mxu1 %v4047_v0  ;;  %s4193_s23 = scalar_lea.vmem %s4371_s0, %s3075_s20  ;;  %v4053_v8 = vld [vmem:[%s4372_s1 + $0x8] sm:$0xff]   ;;  %v4054_v9 = vld [vmem:[%s4372_s1] sm:$0xff]   ;;  %s4279_s8 = scalar_lea.vmem %s4373_s2, %s3075_s20 }
   0xf   : > { %3865 = vmatprep.subr.bf16.mxu0 %v4048_v1  ;;  %4008 = vmatprep.subr.bf16.mxu1 %v4048_v1  ;;  %v4055_v4 = vld [vmem:[%s4193_s23] sm:$0xff]   ;;  %v4057_v10 = vld [vmem:[%s4193_s23 + $0x8] sm:$0xff]   ;;  %v4059_v12 = vld [vmem:[%s4193_s23 + $0x10] sm:$0xff]  }
  0x10   : > { %v4056_v5 = vld [vmem:[%s4193_s23 + $0x100] sm:$0xff]   ;;  %3879 = vmatprep.mubr.bf16.mxu0 %v4055_v4  ;;  %v4058_v11 = vld [vmem:[%s4193_s23 + $0x108] sm:$0xff]   ;;  %v4060_v13 = vld [vmem:[%s4193_s23 + $0x110] sm:$0xff]  }
  0x11   : > { %3943 = vmatprep.mubr.bf16.mxu1 %v4056_v5  ;;  %v4061_v14 = vld [vmem:[%s4193_s23 + $0x18] sm:$0xff]   ;;  %v4063_v16 = vld [vmem:[%s4193_s23 + $0x20] sm:$0xff]   ;;  %v4065_v18 = vld [vmem:[%s4193_s23 + $0x28] sm:$0xff]  }
  0x12   : > { %3866 = vmatpush3.bf16.msra.mxu0 %v4048_v1  ;;  %4016 = vmatpush3.bf16.msra.mxu1 %v4048_v1  ;;  %v4062_v15 = vld [vmem:[%s4193_s23 + $0x118] sm:$0xff]   ;;  %v4064_v17 = vld [vmem:[%s4193_s23 + $0x120] sm:$0xff]   ;;  %v4066_v19 = vld [vmem:[%s4193_s23 + $0x128] sm:$0xff]  }
  0x13   : > { %3867 = vmatprep.subr.bf16.mxu0 %v4049_v2  ;;  %4009 = vmatprep.subr.bf16.mxu1 %v4049_v2  ;;  %v4067_v20 = vld [vmem:[%s4193_s23 + $0x30] sm:$0xff]   ;;  %v4069_v22 = vld [vmem:[%s4193_s23 + $0x38] sm:$0xff]   ;;  %v4071_v24 = vld [vmem:[%s4193_s23 + $0x40] sm:$0xff]  }
  0x14   : > { %v4068_v21 = vld [vmem:[%s4193_s23 + $0x130] sm:$0xff]   ;;  %v4070_v23 = vld [vmem:[%s4193_s23 + $0x138] sm:$0xff]   ;;  %v4072_v25 = vld [vmem:[%s4193_s23 + $0x140] sm:$0xff]  }
  0x15   : > { %v4073_v26 = vld [vmem:[%s4193_s23 + $0x48] sm:$0xff]   ;;  %v4075_v28 = vld [vmem:[%s4193_s23 + $0x50] sm:$0xff]   ;;  %v4077_v30 = vld [vmem:[%s4193_s23 + $0x58] sm:$0xff]  }
  0x16   : > { %3868 = vmatpush3.bf16.msra.mxu0 %v4049_v2  ;;  %4017 = vmatpush3.bf16.msra.mxu1 %v4049_v2  ;;  %v4074_v27 = vld [vmem:[%s4193_s23 + $0x148] sm:$0xff]   ;;  %v4076_v29 = vld [vmem:[%s4193_s23 + $0x150] sm:$0xff]   ;;  %v4078_v31 = vld [vmem:[%s4193_s23 + $0x158] sm:$0xff]  }
  0x17   : > { %3869 = vmatprep.subr.bf16.mxu0 %v4050_v3  ;;  %4010 = vmatprep.subr.bf16.mxu1 %v4050_v3  ;;  %v4079_v32 = vld [vmem:[%s4193_s23 + $0x60] sm:$0xff]   ;;  %v4081_v34 = vld [vmem:[%s4193_s23 + $0x68] sm:$0xff]   ;;  %v4083_v36 = vld [vmem:[%s4193_s23 + $0x70] sm:$0xff]  }
  0x18   : > { %v4080_v33 = vld [vmem:[%s4193_s23 + $0x160] sm:$0xff]   ;;  %v4082_v35 = vld [vmem:[%s4193_s23 + $0x168] sm:$0xff]   ;;  %v4084_v37 = vld [vmem:[%s4193_s23 + $0x170] sm:$0xff]  }
  0x19   : > { %v4085_v38 = vld [vmem:[%s4193_s23 + $0x78] sm:$0xff]   ;;  %v4087_v40 = vld [vmem:[%s4193_s23 + $0x80] sm:$0xff]   ;;  %v4089_v42 = vld [vmem:[%s4193_s23 + $0x88] sm:$0xff]  }
  0x1a   : > { %3870 = vmatpush3.bf16.msra.mxu0 %v4050_v3  ;;  %4018 = vmatpush3.bf16.msra.mxu1 %v4050_v3  ;;  %v4086_v39 = vld [vmem:[%s4193_s23 + $0x178] sm:$0xff]   ;;  %v4088_v41 = vld [vmem:[%s4193_s23 + $0x180] sm:$0xff]   ;;  %v4090_v43 = vld [vmem:[%s4193_s23 + $0x188] sm:$0xff]  }
  0x1b   : > { %3871 = vmatprep.subr.bf16.mxu0 %v4051_v6  ;;  %4011 = vmatprep.subr.bf16.mxu1 %v4051_v6  ;;  %v4091_v44 = vld [vmem:[%s4193_s23 + $0x90] sm:$0xff]   ;;  %v4093_v46 = vld [vmem:[%s4193_s23 + $0x98] sm:$0xff]   ;;  %v4095_v48 = vld [vmem:[%s4193_s23 + $0xa0] sm:$0xff]  }
  0x1c   : > { %v4092_v45 = vld [vmem:[%s4193_s23 + $0x190] sm:$0xff]   ;;  %v4094_v47 = vld [vmem:[%s4193_s23 + $0x198] sm:$0xff]   ;;  %v4096_v49 = vld [vmem:[%s4193_s23 + $0x1a0] sm:$0xff]  }
  0x1d   : > { %v4097_v50 = vld [vmem:[%s4193_s23 + $0xa8] sm:$0xff]   ;;  %v4099_v52 = vld [vmem:[%s4193_s23 + $0xb0] sm:$0xff]   ;;  %v4101_v54 = vld [vmem:[%s4193_s23 + $0xb8] sm:$0xff]  }
  0x1e   : > { %3872 = vmatpush3.bf16.msra.mxu0 %v4051_v6  ;;  %4019 = vmatpush3.bf16.msra.mxu1 %v4051_v6  ;;  %v4098_v51 = vld [vmem:[%s4193_s23 + $0x1a8] sm:$0xff]   ;;  %v4100_v53 = vld [vmem:[%s4193_s23 + $0x1b0] sm:$0xff]   ;;  %v4102_v55 = vld [vmem:[%s4193_s23 + $0x1b8] sm:$0xff]  }
  0x1f   : > { %3873 = vmatprep.subr.bf16.mxu0 %v4052_v7  ;;  %4012 = vmatprep.subr.bf16.mxu1 %v4052_v7  ;;  %v4103_v56 = vld [vmem:[%s4193_s23 + $0xc0] sm:$0xff]   ;;  %v4105_v58 = vld [vmem:[%s4193_s23 + $0xc8] sm:$0xff]   ;;  %v4107_v60 = vld [vmem:[%s4193_s23 + $0xd0] sm:$0xff]  }
  0x20   : > { %v4104_v57 = vld [vmem:[%s4193_s23 + $0x1c0] sm:$0xff]   ;;  %v4106_v59 = vld [vmem:[%s4193_s23 + $0x1c8] sm:$0xff]   ;;  %v4108_v61 = vld [vmem:[%s4193_s23 + $0x1d0] sm:$0xff]  }
  0x21   : > { %v4109_v62 = vld [vmem:[%s4193_s23 + $0xd8] sm:$0xff]   ;;  %v4111_v0 = vld [vmem:[%s4193_s23 + $0xe0] sm:$0xff]   ;;  %v4113_v2 = vld [vmem:[%s4193_s23 + $0xe8] sm:$0xff]  }
  0x22   : > { %3874 = vmatpush3.bf16.msra.mxu0 %v4052_v7  ;;  %4020 = vmatpush3.bf16.msra.mxu1 %v4052_v7  ;;  %v4110_v63 = vld [vmem:[%s4193_s23 + $0x1d8] sm:$0xff]   ;;  %v4112_v1 = vld [vmem:[%s4193_s23 + $0x1e0] sm:$0xff]   ;;  %v4114_v3 = vld [vmem:[%s4193_s23 + $0x1e8] sm:$0xff]  }
  0x23   : > { %3875 = vmatprep.subr.bf16.mxu0 %v4053_v8  ;;  %4013 = vmatprep.subr.bf16.mxu1 %v4053_v8  ;;  %v4115_v4 = vld [vmem:[%s4193_s23 + $0xf0] sm:$0xff]   ;;  %v4117_v6 = vld [vmem:[%s4193_s23 + $0xf8] sm:$0xff]  }
  0x24   : > { %v4116_v5 = vld [vmem:[%s4193_s23 + $0x1f0] sm:$0xff]   ;;  %v4118_v7 = vld [vmem:[%s4193_s23 + $0x1f8] sm:$0xff]  }
  0x26   : > { %3876 = vmatpush3.bf16.msra.mxu0 %v4053_v8  ;;  %4021 = vmatpush3.bf16.msra.mxu1 %v4053_v8 }
  0x27   : > { %3877 = vmatprep.subr.bf16.mxu0 %v4054_v9  ;;  %4014 = vmatprep.subr.bf16.mxu1 %v4054_v9 }
  0x2a   : > { %3878 = vmatpush3.bf16.msra.mxu0 %v4054_v9  ;;  %4022 = vmatpush3.bf16.msra.mxu1 %v4054_v9 }
  0x2d   : > { %3880 = vmatmul.mubr.bf16.vlgmr.msra.gmra.mxu0 %v4057_v10  ;;  %3944 = vmatmul.mubr.bf16.vlgmr.msra.gmra.mxu1 %v4058_v11 }
  0x2e   : > { %3883 = vmatprep.mubr.bf16.mxu0 %v4059_v12  ;;  %3947 = vmatprep.mubr.bf16.mxu1 %v4060_v13 }
  0x35   : > { %3884 = vmatmul.mubr.bf16.gmra.mxu0 %v4061_v14  ;;  %3948 = vmatmul.mubr.bf16.gmra.mxu1 %v4062_v15 }
  0x36   : > { %3887 = vmatprep.mubr.bf16.mxu0 %v4063_v16  ;;  %3951 = vmatprep.mubr.bf16.mxu1 %v4064_v17 }
  0x3d   : > { %3888 = vmatmul.mubr.bf16.gmra.mxu0 %v4065_v18  ;;  %3952 = vmatmul.mubr.bf16.gmra.mxu1 %v4066_v19 }
  0x3e   : > { %3891 = vmatprep.mubr.bf16.mxu0 %v4067_v20  ;;  %3955 = vmatprep.mubr.bf16.mxu1 %v4068_v21 }
  0x45   : > { %3892 = vmatmul.mubr.bf16.gmra.mxu0 %v4069_v22  ;;  %3956 = vmatmul.mubr.bf16.gmra.mxu1 %v4070_v23 }
  0x46   : > { %3895 = vmatprep.mubr.bf16.mxu0 %v4071_v24  ;;  %3959 = vmatprep.mubr.bf16.mxu1 %v4072_v25 }
  0x4d   : > { %3896 = vmatmul.mubr.bf16.gmra.mxu0 %v4073_v26  ;;  %3960 = vmatmul.mubr.bf16.gmra.mxu1 %v4074_v27 }
  0x4e   : > { %3899 = vmatprep.mubr.bf16.mxu0 %v4075_v28  ;;  %3963 = vmatprep.mubr.bf16.mxu1 %v4076_v29 }
  0x55   : > { %3900 = vmatmul.mubr.bf16.gmra.mxu0 %v4077_v30  ;;  %3964 = vmatmul.mubr.bf16.gmra.mxu1 %v4078_v31 }
  0x56   : > { %3903 = vmatprep.mubr.bf16.mxu0 %v4079_v32  ;;  %3967 = vmatprep.mubr.bf16.mxu1 %v4080_v33 }
  0x5d   : > { %3904 = vmatmul.mubr.bf16.gmra.mxu0 %v4081_v34  ;;  %3968 = vmatmul.mubr.bf16.gmra.mxu1 %v4082_v35 }
  0x5e   : > { %3907 = vmatprep.mubr.bf16.mxu0 %v4083_v36  ;;  %3971 = vmatprep.mubr.bf16.mxu1 %v4084_v37 }
  0x65   : > { %3908 = vmatmul.mubr.bf16.gmra.mxu0 %v4085_v38  ;;  %3972 = vmatmul.mubr.bf16.gmra.mxu1 %v4086_v39 }
  0x66   : > { %3911 = vmatprep.mubr.bf16.mxu0 %v4087_v40  ;;  %3975 = vmatprep.mubr.bf16.mxu1 %v4088_v41 }
  0x6d   : > { %3912 = vmatmul.mubr.bf16.gmra.mxu0 %v4089_v42  ;;  %3976 = vmatmul.mubr.bf16.gmra.mxu1 %v4090_v43 }
  0x6e   : > { %3915 = vmatprep.mubr.bf16.mxu0 %v4091_v44  ;;  %3979 = vmatprep.mubr.bf16.mxu1 %v4092_v45 }
  0x75   : > { %3916 = vmatmul.mubr.bf16.gmra.mxu0 %v4093_v46  ;;  %3980 = vmatmul.mubr.bf16.gmra.mxu1 %v4094_v47 }
  0x76   : > { %3919 = vmatprep.mubr.bf16.mxu0 %v4095_v48  ;;  %3983 = vmatprep.mubr.bf16.mxu1 %v4096_v49 }
  0x7d   : > { %3920 = vmatmul.mubr.bf16.gmra.mxu0 %v4097_v50  ;;  %3984 = vmatmul.mubr.bf16.gmra.mxu1 %v4098_v51 }
  0x7e   : > { %3923 = vmatprep.mubr.bf16.mxu0 %v4099_v52  ;;  %3987 = vmatprep.mubr.bf16.mxu1 %v4100_v53 }
  0x85   : > { %3924 = vmatmul.mubr.bf16.gmra.mxu0 %v4101_v54  ;;  %3988 = vmatmul.mubr.bf16.gmra.mxu1 %v4102_v55 }
  0x86   : > { %3927 = vmatprep.mubr.bf16.mxu0 %v4103_v56  ;;  %3991 = vmatprep.mubr.bf16.mxu1 %v4104_v57 }
  0x8d   : > { %3928 = vmatmul.mubr.bf16.gmra.mxu0 %v4105_v58  ;;  %3992 = vmatmul.mubr.bf16.gmra.mxu1 %v4106_v59 }
  0x8e   : > { %3931 = vmatprep.mubr.bf16.mxu0 %v4107_v60  ;;  %3995 = vmatprep.mubr.bf16.mxu1 %v4108_v61 }
  0x95   : > { %3932 = vmatmul.mubr.bf16.gmra.mxu0 %v4109_v62  ;;  %3996 = vmatmul.mubr.bf16.gmra.mxu1 %v4110_v63 }
  0x96   : > { %3935 = vmatprep.mubr.bf16.mxu0 %v4111_v0  ;;  %3999 = vmatprep.mubr.bf16.mxu1 %v4112_v1 }
  0x9d   : > { %3936 = vmatmul.mubr.bf16.gmra.mxu0 %v4113_v2  ;;  %4000 = vmatmul.mubr.bf16.gmra.mxu1 %v4114_v3 }
  0x9e   : > { %3939 = vmatprep.mubr.bf16.mxu0 %v4115_v4  ;;  %4003 = vmatprep.mubr.bf16.mxu1 %v4116_v5 }
  0xa5   : > { %3940 = vmatmul.mubr.bf16.gmra.mxu0 %v4117_v6  ;;  %4004 = vmatmul.mubr.bf16.gmra.mxu1 %v4118_v7 }
  0xed   : > { %v3881_v8 = vpop.f32.mrf.mxu0  ;;  %v3945_v9 = vpop.f32.mrf.mxu1 }
  0xee   : > { %vm1963_vm0 = vcmp.ge.f32.partialorder %v3881_v8, 0.0  ;;  %v2091_v10 = vmul.f32 0.2, %v3881_v8  ;;  %v2155_v11 = vmul.f32 0.2, %v3945_v9  ;;  %vm2027_vm1 = vcmp.ge.f32.partialorder %v3945_v9, 0.0 }
  0xef   : > { %v1063_v12 = vpop.f32.mrf.mxu0  ;;  %v1319_v13 = vpop.f32.mrf.mxu1 }
  0xf0   : > { %v2219_v14 = vsel %vm1963_vm0, %v3881_v8, %v2091_v10  ;;  %v2089_v15 = vmul.f32 0.2, %v1063_v12  ;;  %vm1961_vm2 = vcmp.ge.f32.partialorder %v1063_v12, 0.0  ;;  %v2283_v19 = vsel %vm2027_vm1, %v3945_v9, %v2155_v11 }
  0xf1   : > { %v3882_v16 = vpop.f32.mrf.mxu0  ;;  %v3946_v17 = vpop.f32.mrf.mxu1  ;;  %vm2025_vm5 = vcmp.ge.f32.partialorder %v1319_v13, 0.0  ;;  %v2153_v20 = vmul.f32 0.2, %v1319_v13 }
  0xf2   : > { %vm1964_vm3 = vcmp.ge.f32.partialorder %v3882_v16, 0.0  ;;  %v2092_v18 = vmul.f32 0.2, %v3882_v16  ;;  %vm2028_vm4 = vcmp.ge.f32.partialorder %v3946_v17, 0.0  ;;  %v2156_v21 = vmul.f32 0.2, %v3946_v17 }
  0xf3   : > { %v1066_v22 = vpop.f32.mrf.mxu0  ;;  %v1322_v23 = vpop.f32.mrf.mxu1  ;;  %v2217_v26 = vsel %vm1961_vm2, %v1063_v12, %v2089_v15  ;;  %v2281_v35 = vsel %vm2025_vm5, %v1319_v13, %v2153_v20 }
  0xf4   : > { %v2220_v24 = vsel %vm1964_vm3, %v3882_v16, %v2092_v18  ;;  %vm1962_vm6 = vcmp.ge.f32.partialorder %v1066_v22, 0.0  ;;  %v2090_v25 = vmul.f32 0.2, %v1066_v22  ;;  %vm2026_vm7 = vcmp.ge.f32.partialorder %v1322_v23, 0.0 }
  0xf5   : > { %v3416_v27 = vpack.c.bf16 %v2220_v24, %v2219_v14  ;;  %v2284_v28 = vsel %vm2028_vm4, %v3946_v17, %v2156_v21  ;;  %v2154_v29 = vmul.f32 0.2, %v1322_v23  ;;  %v3885_v30 = vpop.f32.mrf.mxu0  ;;  %v3949_v31 = vpop.f32.mrf.mxu1 }
  0xf6   : > { %v3576_v32 = vpack.c.bf16 %v2284_v28, %v2283_v19  ;;  %v2218_v33 = vsel %vm1962_vm6, %v1066_v22, %v2090_v25  ;;  %vm1967_vm8 = vcmp.ge.f32.partialorder %v3885_v30, 0.0  ;;  %v2095_v34 = vmul.f32 0.2, %v3885_v30 }
  0xf7   : > { %3728 = vst [vmem:[%s4279_s8 + $0x8] sm:$0xff] %v3416_v27   ;;  %v3411_v36 = vpack.c.bf16 %v2218_v33, %v2217_v26  ;;  %v2282_v37 = vsel %vm2026_vm7, %v1322_v23, %v2154_v29  ;;  %v2159_v38 = vmul.f32 0.2, %v3949_v31  ;;  %v1079_v39 = vpop.f32.mrf.mxu0  ;;  %v1335_v40 = vpop.f32.mrf.mxu1  ;;  %vm2031_vm9 = vcmp.ge.f32.partialorder %v3949_v31, 0.0 }
  0xf8   : > { %3760 = vst [vmem:[%s4279_s8 + $0x108] sm:$0xff] %v3576_v32   ;;  %v3571_v41 = vpack.c.bf16 %v2282_v37, %v2281_v35  ;;  %v2223_v42 = vsel %vm1967_vm8, %v3885_v30, %v2095_v34  ;;  %v2093_v43 = vmul.f32 0.2, %v1079_v39  ;;  %vm1965_vm10 = vcmp.ge.f32.partialorder %v1079_v39, 0.0 }
  0xf9   : > { %3412 = vst [vmem:[%s4279_s8] sm:$0xff] %v3411_v36   ;;  %v3886_v44 = vpop.f32.mrf.mxu0  ;;  %v3950_v45 = vpop.f32.mrf.mxu1  ;;  %v2287_v47 = vsel %vm2031_vm9, %v3949_v31, %v2159_v38  ;;  %vm2029_vm13 = vcmp.ge.f32.partialorder %v1335_v40, 0.0  ;;  %v2157_v48 = vmul.f32 0.2, %v1335_v40 }
  0xfa   : > { %3759 = vst [vmem:[%s4279_s8 + $0x100] sm:$0xff] %v3571_v41   ;;  %vm1968_vm11 = vcmp.ge.f32.partialorder %v3886_v44, 0.0  ;;  %v2096_v46 = vmul.f32 0.2, %v3886_v44  ;;  %vm2032_vm12 = vcmp.ge.f32.partialorder %v3950_v45, 0.0  ;;  %v2221_v54 = vsel %vm1965_vm10, %v1079_v39, %v2093_v43 }
  0xfb   : > { %v2160_v49 = vmul.f32 0.2, %v3950_v45  ;;  %v1082_v50 = vpop.f32.mrf.mxu0  ;;  %v1338_v51 = vpop.f32.mrf.mxu1  ;;  %v2285_v63 = vsel %vm2029_vm13, %v1335_v40, %v2157_v48 }
  0xfc   : > { %v2224_v52 = vsel %vm1968_vm11, %v3886_v44, %v2096_v46  ;;  %vm1966_vm14 = vcmp.ge.f32.partialorder %v1082_v50, 0.0  ;;  %v2094_v53 = vmul.f32 0.2, %v1082_v50  ;;  %vm2030_vm15 = vcmp.ge.f32.partialorder %v1338_v51, 0.0 }
  0xfd   : > { %v3426_v55 = vpack.c.bf16 %v2224_v52, %v2223_v42  ;;  %v2288_v56 = vsel %vm2032_vm12, %v3950_v45, %v2160_v49  ;;  %v2158_v57 = vmul.f32 0.2, %v1338_v51  ;;  %v3889_v58 = vpop.f32.mrf.mxu0  ;;  %v3953_v59 = vpop.f32.mrf.mxu1 }
  0xfe   : > { %v3586_v60 = vpack.c.bf16 %v2288_v56, %v2287_v47  ;;  %v2222_v61 = vsel %vm1966_vm14, %v1082_v50, %v2094_v53  ;;  %vm1971_vm0 = vcmp.ge.f32.partialorder %v3889_v58, 0.0  ;;  %v2099_v62 = vmul.f32 0.2, %v3889_v58 }
  0xff   : > { %3730 = vst [vmem:[%s4279_s8 + $0x18] sm:$0xff] %v3426_v55   ;;  %v3421_v0 = vpack.c.bf16 %v2222_v61, %v2221_v54  ;;  %v2286_v1 = vsel %vm2030_vm15, %v1338_v51, %v2158_v57  ;;  %v2163_v2 = vmul.f32 0.2, %v3953_v59  ;;  %v1095_v3 = vpop.f32.mrf.mxu0  ;;  %v1351_v4 = vpop.f32.mrf.mxu1  ;;  %vm2035_vm1 = vcmp.ge.f32.partialorder %v3953_v59, 0.0 }
 0x100   : > { %3762 = vst [vmem:[%s4279_s8 + $0x118] sm:$0xff] %v3586_v60   ;;  %v3581_v5 = vpack.c.bf16 %v2286_v1, %v2285_v63  ;;  %v2227_v6 = vsel %vm1971_vm0, %v3889_v58, %v2099_v62  ;;  %v2097_v7 = vmul.f32 0.2, %v1095_v3  ;;  %vm1969_vm2 = vcmp.ge.f32.partialorder %v1095_v3, 0.0 }
 0x101   : > { %3729 = vst [vmem:[%s4279_s8 + $0x10] sm:$0xff] %v3421_v0   ;;  %v3890_v8 = vpop.f32.mrf.mxu0  ;;  %v3954_v9 = vpop.f32.mrf.mxu1  ;;  %v2291_v11 = vsel %vm2035_vm1, %v3953_v59, %v2163_v2  ;;  %vm2033_vm5 = vcmp.ge.f32.partialorder %v1351_v4, 0.0  ;;  %v2161_v12 = vmul.f32 0.2, %v1351_v4 }
 0x102   : > { %3761 = vst [vmem:[%s4279_s8 + $0x110] sm:$0xff] %v3581_v5   ;;  %vm1972_vm3 = vcmp.ge.f32.partialorder %v3890_v8, 0.0  ;;  %v2100_v10 = vmul.f32 0.2, %v3890_v8  ;;  %vm2036_vm4 = vcmp.ge.f32.partialorder %v3954_v9, 0.0  ;;  %v2225_v18 = vsel %vm1969_vm2, %v1095_v3, %v2097_v7 }
 0x103   : > { %v2164_v13 = vmul.f32 0.2, %v3954_v9  ;;  %v1098_v14 = vpop.f32.mrf.mxu0  ;;  %v1354_v15 = vpop.f32.mrf.mxu1  ;;  %v2289_v27 = vsel %vm2033_vm5, %v1351_v4, %v2161_v12 }
 0x104   : > { %v2228_v16 = vsel %vm1972_vm3, %v3890_v8, %v2100_v10  ;;  %vm1970_vm6 = vcmp.ge.f32.partialorder %v1098_v14, 0.0  ;;  %v2098_v17 = vmul.f32 0.2, %v1098_v14  ;;  %vm2034_vm7 = vcmp.ge.f32.partialorder %v1354_v15, 0.0 }
 0x105   : > { %v3436_v19 = vpack.c.bf16 %v2228_v16, %v2227_v6  ;;  %v2292_v20 = vsel %vm2036_vm4, %v3954_v9, %v2164_v13  ;;  %v2162_v21 = vmul.f32 0.2, %v1354_v15  ;;  %v3893_v22 = vpop.f32.mrf.mxu0  ;;  %v3957_v23 = vpop.f32.mrf.mxu1 }
 0x106   : > { %v3596_v24 = vpack.c.bf16 %v2292_v20, %v2291_v11  ;;  %v2226_v25 = vsel %vm1970_vm6, %v1098_v14, %v2098_v17  ;;  %vm1975_vm8 = vcmp.ge.f32.partialorder %v3893_v22, 0.0  ;;  %v2103_v26 = vmul.f32 0.2, %v3893_v22 }
 0x107   : > { %3732 = vst [vmem:[%s4279_s8 + $0x28] sm:$0xff] %v3436_v19   ;;  %v3431_v28 = vpack.c.bf16 %v2226_v25, %v2225_v18  ;;  %v2290_v29 = vsel %vm2034_vm7, %v1354_v15, %v2162_v21  ;;  %v2167_v30 = vmul.f32 0.2, %v3957_v23  ;;  %v1111_v31 = vpop.f32.mrf.mxu0  ;;  %v1367_v32 = vpop.f32.mrf.mxu1  ;;  %vm2039_vm9 = vcmp.ge.f32.partialorder %v3957_v23, 0.0 }
 0x108   : > { %3764 = vst [vmem:[%s4279_s8 + $0x128] sm:$0xff] %v3596_v24   ;;  %v3591_v33 = vpack.c.bf16 %v2290_v29, %v2289_v27  ;;  %v2231_v34 = vsel %vm1975_vm8, %v3893_v22, %v2103_v26  ;;  %v2101_v35 = vmul.f32 0.2, %v1111_v31  ;;  %vm1973_vm10 = vcmp.ge.f32.partialorder %v1111_v31, 0.0 }
 0x109   : > { %3731 = vst [vmem:[%s4279_s8 + $0x20] sm:$0xff] %v3431_v28   ;;  %v3894_v36 = vpop.f32.mrf.mxu0  ;;  %v3958_v37 = vpop.f32.mrf.mxu1  ;;  %v2295_v39 = vsel %vm2039_vm9, %v3957_v23, %v2167_v30  ;;  %vm2037_vm13 = vcmp.ge.f32.partialorder %v1367_v32, 0.0  ;;  %v2165_v40 = vmul.f32 0.2, %v1367_v32 }
 0x10a   : > { %3763 = vst [vmem:[%s4279_s8 + $0x120] sm:$0xff] %v3591_v33   ;;  %vm1976_vm11 = vcmp.ge.f32.partialorder %v3894_v36, 0.0  ;;  %v2104_v38 = vmul.f32 0.2, %v3894_v36  ;;  %vm2040_vm12 = vcmp.ge.f32.partialorder %v3958_v37, 0.0  ;;  %v2229_v46 = vsel %vm1973_vm10, %v1111_v31, %v2101_v35 }
 0x10b   : > { %v2168_v41 = vmul.f32 0.2, %v3958_v37  ;;  %v1114_v42 = vpop.f32.mrf.mxu0  ;;  %v1370_v43 = vpop.f32.mrf.mxu1  ;;  %v2293_v55 = vsel %vm2037_vm13, %v1367_v32, %v2165_v40 }
 0x10c   : > { %v2232_v44 = vsel %vm1976_vm11, %v3894_v36, %v2104_v38  ;;  %vm1974_vm14 = vcmp.ge.f32.partialorder %v1114_v42, 0.0  ;;  %v2102_v45 = vmul.f32 0.2, %v1114_v42  ;;  %vm2038_vm15 = vcmp.ge.f32.partialorder %v1370_v43, 0.0 }
 0x10d   : > { %v3446_v47 = vpack.c.bf16 %v2232_v44, %v2231_v34  ;;  %v2296_v48 = vsel %vm2040_vm12, %v3958_v37, %v2168_v41  ;;  %v2166_v49 = vmul.f32 0.2, %v1370_v43  ;;  %v3897_v50 = vpop.f32.mrf.mxu0  ;;  %v3961_v51 = vpop.f32.mrf.mxu1 }
 0x10e   : > { %v3606_v52 = vpack.c.bf16 %v2296_v48, %v2295_v39  ;;  %v2230_v53 = vsel %vm1974_vm14, %v1114_v42, %v2102_v45  ;;  %vm1979_vm0 = vcmp.ge.f32.partialorder %v3897_v50, 0.0  ;;  %v2107_v54 = vmul.f32 0.2, %v3897_v50 }
 0x10f   : > { %3734 = vst [vmem:[%s4279_s8 + $0x38] sm:$0xff] %v3446_v47   ;;  %v3441_v56 = vpack.c.bf16 %v2230_v53, %v2229_v46  ;;  %v2294_v57 = vsel %vm2038_vm15, %v1370_v43, %v2166_v49  ;;  %v2171_v58 = vmul.f32 0.2, %v3961_v51  ;;  %v1127_v59 = vpop.f32.mrf.mxu0  ;;  %v1383_v60 = vpop.f32.mrf.mxu1  ;;  %vm2043_vm1 = vcmp.ge.f32.partialorder %v3961_v51, 0.0 }
 0x110   : > { %3766 = vst [vmem:[%s4279_s8 + $0x138] sm:$0xff] %v3606_v52   ;;  %v3601_v61 = vpack.c.bf16 %v2294_v57, %v2293_v55  ;;  %v2235_v62 = vsel %vm1979_vm0, %v3897_v50, %v2107_v54  ;;  %v2105_v63 = vmul.f32 0.2, %v1127_v59  ;;  %vm1977_vm2 = vcmp.ge.f32.partialorder %v1127_v59, 0.0 }
 0x111   : > { %3733 = vst [vmem:[%s4279_s8 + $0x30] sm:$0xff] %v3441_v56   ;;  %v3898_v0 = vpop.f32.mrf.mxu0  ;;  %v3962_v1 = vpop.f32.mrf.mxu1  ;;  %v2299_v3 = vsel %vm2043_vm1, %v3961_v51, %v2171_v58  ;;  %vm2041_vm5 = vcmp.ge.f32.partialorder %v1383_v60, 0.0  ;;  %v2169_v4 = vmul.f32 0.2, %v1383_v60 }
 0x112   : > { %3765 = vst [vmem:[%s4279_s8 + $0x130] sm:$0xff] %v3601_v61   ;;  %vm1980_vm3 = vcmp.ge.f32.partialorder %v3898_v0, 0.0  ;;  %v2108_v2 = vmul.f32 0.2, %v3898_v0  ;;  %vm2044_vm4 = vcmp.ge.f32.partialorder %v3962_v1, 0.0  ;;  %v2233_v10 = vsel %vm1977_vm2, %v1127_v59, %v2105_v63 }
 0x113   : > { %v2172_v5 = vmul.f32 0.2, %v3962_v1  ;;  %v1130_v6 = vpop.f32.mrf.mxu0  ;;  %v1386_v7 = vpop.f32.mrf.mxu1  ;;  %v2297_v19 = vsel %vm2041_vm5, %v1383_v60, %v2169_v4 }
 0x114   : > { %v2236_v8 = vsel %vm1980_vm3, %v3898_v0, %v2108_v2  ;;  %vm1978_vm6 = vcmp.ge.f32.partialorder %v1130_v6, 0.0  ;;  %v2106_v9 = vmul.f32 0.2, %v1130_v6  ;;  %vm2042_vm7 = vcmp.ge.f32.partialorder %v1386_v7, 0.0 }
 0x115   : > { %v3456_v11 = vpack.c.bf16 %v2236_v8, %v2235_v62  ;;  %v2300_v12 = vsel %vm2044_vm4, %v3962_v1, %v2172_v5  ;;  %v2170_v13 = vmul.f32 0.2, %v1386_v7  ;;  %v3901_v14 = vpop.f32.mrf.mxu0  ;;  %v3965_v15 = vpop.f32.mrf.mxu1 }
 0x116   : > { %v3616_v16 = vpack.c.bf16 %v2300_v12, %v2299_v3  ;;  %v2234_v17 = vsel %vm1978_vm6, %v1130_v6, %v2106_v9  ;;  %vm1983_vm8 = vcmp.ge.f32.partialorder %v3901_v14, 0.0  ;;  %v2111_v18 = vmul.f32 0.2, %v3901_v14 }
 0x117   : > { %3736 = vst [vmem:[%s4279_s8 + $0x48] sm:$0xff] %v3456_v11   ;;  %v3451_v20 = vpack.c.bf16 %v2234_v17, %v2233_v10  ;;  %v2298_v21 = vsel %vm2042_vm7, %v1386_v7, %v2170_v13  ;;  %v2175_v22 = vmul.f32 0.2, %v3965_v15  ;;  %v1143_v23 = vpop.f32.mrf.mxu0  ;;  %v1399_v24 = vpop.f32.mrf.mxu1  ;;  %vm2047_vm9 = vcmp.ge.f32.partialorder %v3965_v15, 0.0 }
 0x118   : > { %3768 = vst [vmem:[%s4279_s8 + $0x148] sm:$0xff] %v3616_v16   ;;  %v3611_v25 = vpack.c.bf16 %v2298_v21, %v2297_v19  ;;  %v2239_v26 = vsel %vm1983_vm8, %v3901_v14, %v2111_v18  ;;  %v2109_v27 = vmul.f32 0.2, %v1143_v23  ;;  %vm1981_vm10 = vcmp.ge.f32.partialorder %v1143_v23, 0.0 }
 0x119   : > { %3735 = vst [vmem:[%s4279_s8 + $0x40] sm:$0xff] %v3451_v20   ;;  %v3902_v28 = vpop.f32.mrf.mxu0  ;;  %v3966_v29 = vpop.f32.mrf.mxu1  ;;  %v2303_v31 = vsel %vm2047_vm9, %v3965_v15, %v2175_v22  ;;  %vm2045_vm13 = vcmp.ge.f32.partialorder %v1399_v24, 0.0  ;;  %v2173_v32 = vmul.f32 0.2, %v1399_v24 }
 0x11a   : > { %3767 = vst [vmem:[%s4279_s8 + $0x140] sm:$0xff] %v3611_v25   ;;  %vm1984_vm11 = vcmp.ge.f32.partialorder %v3902_v28, 0.0  ;;  %v2112_v30 = vmul.f32 0.2, %v3902_v28  ;;  %vm2048_vm12 = vcmp.ge.f32.partialorder %v3966_v29, 0.0  ;;  %v2237_v38 = vsel %vm1981_vm10, %v1143_v23, %v2109_v27 }
 0x11b   : > { %v2176_v33 = vmul.f32 0.2, %v3966_v29  ;;  %v1146_v34 = vpop.f32.mrf.mxu0  ;;  %v1402_v35 = vpop.f32.mrf.mxu1  ;;  %v2301_v47 = vsel %vm2045_vm13, %v1399_v24, %v2173_v32 }
 0x11c   : > { %v2240_v36 = vsel %vm1984_vm11, %v3902_v28, %v2112_v30  ;;  %vm1982_vm14 = vcmp.ge.f32.partialorder %v1146_v34, 0.0  ;;  %v2110_v37 = vmul.f32 0.2, %v1146_v34  ;;  %vm2046_vm15 = vcmp.ge.f32.partialorder %v1402_v35, 0.0 }
 0x11d   : > { %v3466_v39 = vpack.c.bf16 %v2240_v36, %v2239_v26  ;;  %v2304_v40 = vsel %vm2048_vm12, %v3966_v29, %v2176_v33  ;;  %v2174_v41 = vmul.f32 0.2, %v1402_v35  ;;  %v3905_v42 = vpop.f32.mrf.mxu0  ;;  %v3969_v43 = vpop.f32.mrf.mxu1 }
 0x11e   : > { %v3626_v44 = vpack.c.bf16 %v2304_v40, %v2303_v31  ;;  %v2238_v45 = vsel %vm1982_vm14, %v1146_v34, %v2110_v37  ;;  %vm1987_vm0 = vcmp.ge.f32.partialorder %v3905_v42, 0.0  ;;  %v2115_v46 = vmul.f32 0.2, %v3905_v42 }
 0x11f   : > { %3738 = vst [vmem:[%s4279_s8 + $0x58] sm:$0xff] %v3466_v39   ;;  %v3461_v48 = vpack.c.bf16 %v2238_v45, %v2237_v38  ;;  %v2302_v49 = vsel %vm2046_vm15, %v1402_v35, %v2174_v41  ;;  %v2179_v50 = vmul.f32 0.2, %v3969_v43  ;;  %v1159_v51 = vpop.f32.mrf.mxu0  ;;  %v1415_v52 = vpop.f32.mrf.mxu1  ;;  %vm2051_vm1 = vcmp.ge.f32.partialorder %v3969_v43, 0.0 }
 0x120   : > { %3770 = vst [vmem:[%s4279_s8 + $0x158] sm:$0xff] %v3626_v44   ;;  %v3621_v53 = vpack.c.bf16 %v2302_v49, %v2301_v47  ;;  %v2243_v54 = vsel %vm1987_vm0, %v3905_v42, %v2115_v46  ;;  %v2113_v55 = vmul.f32 0.2, %v1159_v51  ;;  %vm1985_vm2 = vcmp.ge.f32.partialorder %v1159_v51, 0.0 }
 0x121   : > { %3737 = vst [vmem:[%s4279_s8 + $0x50] sm:$0xff] %v3461_v48   ;;  %v3906_v56 = vpop.f32.mrf.mxu0  ;;  %v3970_v57 = vpop.f32.mrf.mxu1  ;;  %v2307_v59 = vsel %vm2051_vm1, %v3969_v43, %v2179_v50  ;;  %vm2049_vm5 = vcmp.ge.f32.partialorder %v1415_v52, 0.0  ;;  %v2177_v60 = vmul.f32 0.2, %v1415_v52 }
 0x122   : > { %3769 = vst [vmem:[%s4279_s8 + $0x150] sm:$0xff] %v3621_v53   ;;  %vm1988_vm3 = vcmp.ge.f32.partialorder %v3906_v56, 0.0  ;;  %v2116_v58 = vmul.f32 0.2, %v3906_v56  ;;  %vm2052_vm4 = vcmp.ge.f32.partialorder %v3970_v57, 0.0  ;;  %v2241_v2 = vsel %vm1985_vm2, %v1159_v51, %v2113_v55 }
 0x123   : > { %v2180_v61 = vmul.f32 0.2, %v3970_v57  ;;  %v1162_v62 = vpop.f32.mrf.mxu0  ;;  %v1418_v63 = vpop.f32.mrf.mxu1  ;;  %v2305_v11 = vsel %vm2049_vm5, %v1415_v52, %v2177_v60 }
 0x124   : > { %v2244_v0 = vsel %vm1988_vm3, %v3906_v56, %v2116_v58  ;;  %vm1986_vm6 = vcmp.ge.f32.partialorder %v1162_v62, 0.0  ;;  %v2114_v1 = vmul.f32 0.2, %v1162_v62  ;;  %vm2050_vm7 = vcmp.ge.f32.partialorder %v1418_v63, 0.0 }
 0x125   : > { %v3476_v3 = vpack.c.bf16 %v2244_v0, %v2243_v54  ;;  %v2308_v4 = vsel %vm2052_vm4, %v3970_v57, %v2180_v61  ;;  %v2178_v5 = vmul.f32 0.2, %v1418_v63  ;;  %v3909_v6 = vpop.f32.mrf.mxu0  ;;  %v3973_v7 = vpop.f32.mrf.mxu1 }
 0x126   : > { %v3636_v8 = vpack.c.bf16 %v2308_v4, %v2307_v59  ;;  %v2242_v9 = vsel %vm1986_vm6, %v1162_v62, %v2114_v1  ;;  %vm1991_vm8 = vcmp.ge.f32.partialorder %v3909_v6, 0.0  ;;  %v2119_v10 = vmul.f32 0.2, %v3909_v6 }
 0x127   : > { %3740 = vst [vmem:[%s4279_s8 + $0x68] sm:$0xff] %v3476_v3   ;;  %v3471_v12 = vpack.c.bf16 %v2242_v9, %v2241_v2  ;;  %v2306_v13 = vsel %vm2050_vm7, %v1418_v63, %v2178_v5  ;;  %v2183_v14 = vmul.f32 0.2, %v3973_v7  ;;  %v1175_v15 = vpop.f32.mrf.mxu0  ;;  %v1431_v16 = vpop.f32.mrf.mxu1  ;;  %vm2055_vm9 = vcmp.ge.f32.partialorder %v3973_v7, 0.0 }
 0x128   : > { %3772 = vst [vmem:[%s4279_s8 + $0x168] sm:$0xff] %v3636_v8   ;;  %v3631_v17 = vpack.c.bf16 %v2306_v13, %v2305_v11  ;;  %v2247_v18 = vsel %vm1991_vm8, %v3909_v6, %v2119_v10  ;;  %v2117_v19 = vmul.f32 0.2, %v1175_v15  ;;  %vm1989_vm10 = vcmp.ge.f32.partialorder %v1175_v15, 0.0 }
 0x129   : > { %3739 = vst [vmem:[%s4279_s8 + $0x60] sm:$0xff] %v3471_v12   ;;  %v3910_v20 = vpop.f32.mrf.mxu0  ;;  %v3974_v21 = vpop.f32.mrf.mxu1  ;;  %v2311_v23 = vsel %vm2055_vm9, %v3973_v7, %v2183_v14  ;;  %vm2053_vm13 = vcmp.ge.f32.partialorder %v1431_v16, 0.0  ;;  %v2181_v24 = vmul.f32 0.2, %v1431_v16 }
 0x12a   : > { %3771 = vst [vmem:[%s4279_s8 + $0x160] sm:$0xff] %v3631_v17   ;;  %vm1992_vm11 = vcmp.ge.f32.partialorder %v3910_v20, 0.0  ;;  %v2120_v22 = vmul.f32 0.2, %v3910_v20  ;;  %vm2056_vm12 = vcmp.ge.f32.partialorder %v3974_v21, 0.0  ;;  %v2245_v30 = vsel %vm1989_vm10, %v1175_v15, %v2117_v19 }
 0x12b   : > { %v2184_v25 = vmul.f32 0.2, %v3974_v21  ;;  %v1178_v26 = vpop.f32.mrf.mxu0  ;;  %v1434_v27 = vpop.f32.mrf.mxu1  ;;  %v2309_v39 = vsel %vm2053_vm13, %v1431_v16, %v2181_v24 }
 0x12c   : > { %v2248_v28 = vsel %vm1992_vm11, %v3910_v20, %v2120_v22  ;;  %vm1990_vm14 = vcmp.ge.f32.partialorder %v1178_v26, 0.0  ;;  %v2118_v29 = vmul.f32 0.2, %v1178_v26  ;;  %vm2054_vm15 = vcmp.ge.f32.partialorder %v1434_v27, 0.0 }
 0x12d   : > { %v3486_v31 = vpack.c.bf16 %v2248_v28, %v2247_v18  ;;  %v2312_v32 = vsel %vm2056_vm12, %v3974_v21, %v2184_v25  ;;  %v2182_v33 = vmul.f32 0.2, %v1434_v27  ;;  %v3913_v34 = vpop.f32.mrf.mxu0  ;;  %v3977_v35 = vpop.f32.mrf.mxu1 }
 0x12e   : > { %v3646_v36 = vpack.c.bf16 %v2312_v32, %v2311_v23  ;;  %v2246_v37 = vsel %vm1990_vm14, %v1178_v26, %v2118_v29  ;;  %vm1995_vm0 = vcmp.ge.f32.partialorder %v3913_v34, 0.0  ;;  %v2123_v38 = vmul.f32 0.2, %v3913_v34 }
 0x12f   : > { %3742 = vst [vmem:[%s4279_s8 + $0x78] sm:$0xff] %v3486_v31   ;;  %v3481_v40 = vpack.c.bf16 %v2246_v37, %v2245_v30  ;;  %v2310_v41 = vsel %vm2054_vm15, %v1434_v27, %v2182_v33  ;;  %v2187_v42 = vmul.f32 0.2, %v3977_v35  ;;  %v1191_v43 = vpop.f32.mrf.mxu0  ;;  %v1447_v44 = vpop.f32.mrf.mxu1  ;;  %vm2059_vm1 = vcmp.ge.f32.partialorder %v3977_v35, 0.0 }
 0x130   : > { %3774 = vst [vmem:[%s4279_s8 + $0x178] sm:$0xff] %v3646_v36   ;;  %v3641_v45 = vpack.c.bf16 %v2310_v41, %v2309_v39  ;;  %v2251_v46 = vsel %vm1995_vm0, %v3913_v34, %v2123_v38  ;;  %v2121_v47 = vmul.f32 0.2, %v1191_v43  ;;  %vm1993_vm2 = vcmp.ge.f32.partialorder %v1191_v43, 0.0 }
 0x131   : > { %3741 = vst [vmem:[%s4279_s8 + $0x70] sm:$0xff] %v3481_v40   ;;  %v3914_v48 = vpop.f32.mrf.mxu0  ;;  %v3978_v49 = vpop.f32.mrf.mxu1  ;;  %v2315_v51 = vsel %vm2059_vm1, %v3977_v35, %v2187_v42  ;;  %vm2057_vm5 = vcmp.ge.f32.partialorder %v1447_v44, 0.0  ;;  %v2185_v52 = vmul.f32 0.2, %v1447_v44 }
 0x132   : > { %3773 = vst [vmem:[%s4279_s8 + $0x170] sm:$0xff] %v3641_v45   ;;  %vm1996_vm3 = vcmp.ge.f32.partialorder %v3914_v48, 0.0  ;;  %v2124_v50 = vmul.f32 0.2, %v3914_v48  ;;  %vm2060_vm4 = vcmp.ge.f32.partialorder %v3978_v49, 0.0  ;;  %v2249_v58 = vsel %vm1993_vm2, %v1191_v43, %v2121_v47 }
 0x133   : > { %v2188_v53 = vmul.f32 0.2, %v3978_v49  ;;  %v1194_v54 = vpop.f32.mrf.mxu0  ;;  %v1450_v55 = vpop.f32.mrf.mxu1  ;;  %v2313_v3 = vsel %vm2057_vm5, %v1447_v44, %v2185_v52 }
 0x134   : > { %v2252_v56 = vsel %vm1996_vm3, %v3914_v48, %v2124_v50  ;;  %vm1994_vm6 = vcmp.ge.f32.partialorder %v1194_v54, 0.0  ;;  %v2122_v57 = vmul.f32 0.2, %v1194_v54  ;;  %vm2058_vm7 = vcmp.ge.f32.partialorder %v1450_v55, 0.0 }
 0x135   : > { %v3496_v59 = vpack.c.bf16 %v2252_v56, %v2251_v46  ;;  %v2316_v60 = vsel %vm2060_vm4, %v3978_v49, %v2188_v53  ;;  %v2186_v61 = vmul.f32 0.2, %v1450_v55  ;;  %v3917_v62 = vpop.f32.mrf.mxu0  ;;  %v3981_v63 = vpop.f32.mrf.mxu1 }
 0x136   : > { %v3656_v0 = vpack.c.bf16 %v2316_v60, %v2315_v51  ;;  %v2250_v1 = vsel %vm1994_vm6, %v1194_v54, %v2122_v57  ;;  %vm1999_vm8 = vcmp.ge.f32.partialorder %v3917_v62, 0.0  ;;  %v2127_v2 = vmul.f32 0.2, %v3917_v62 }
 0x137   : > { %3744 = vst [vmem:[%s4279_s8 + $0x88] sm:$0xff] %v3496_v59   ;;  %v3491_v4 = vpack.c.bf16 %v2250_v1, %v2249_v58  ;;  %v2314_v5 = vsel %vm2058_vm7, %v1450_v55, %v2186_v61  ;;  %v2191_v6 = vmul.f32 0.2, %v3981_v63  ;;  %v1207_v7 = vpop.f32.mrf.mxu0  ;;  %v1463_v8 = vpop.f32.mrf.mxu1  ;;  %vm2063_vm9 = vcmp.ge.f32.partialorder %v3981_v63, 0.0 }
 0x138   : > { %3776 = vst [vmem:[%s4279_s8 + $0x188] sm:$0xff] %v3656_v0   ;;  %v3651_v9 = vpack.c.bf16 %v2314_v5, %v2313_v3  ;;  %v2255_v10 = vsel %vm1999_vm8, %v3917_v62, %v2127_v2  ;;  %v2125_v11 = vmul.f32 0.2, %v1207_v7  ;;  %vm1997_vm10 = vcmp.ge.f32.partialorder %v1207_v7, 0.0 }
 0x139   : > { %3743 = vst [vmem:[%s4279_s8 + $0x80] sm:$0xff] %v3491_v4   ;;  %v3918_v12 = vpop.f32.mrf.mxu0  ;;  %v3982_v13 = vpop.f32.mrf.mxu1  ;;  %v2319_v15 = vsel %vm2063_vm9, %v3981_v63, %v2191_v6  ;;  %vm2061_vm13 = vcmp.ge.f32.partialorder %v1463_v8, 0.0  ;;  %v2189_v16 = vmul.f32 0.2, %v1463_v8 }
 0x13a   : > { %3775 = vst [vmem:[%s4279_s8 + $0x180] sm:$0xff] %v3651_v9   ;;  %vm2000_vm11 = vcmp.ge.f32.partialorder %v3918_v12, 0.0  ;;  %v2128_v14 = vmul.f32 0.2, %v3918_v12  ;;  %vm2064_vm12 = vcmp.ge.f32.partialorder %v3982_v13, 0.0  ;;  %v2253_v22 = vsel %vm1997_vm10, %v1207_v7, %v2125_v11 }
 0x13b   : > { %v2192_v17 = vmul.f32 0.2, %v3982_v13  ;;  %v1210_v18 = vpop.f32.mrf.mxu0  ;;  %v1466_v19 = vpop.f32.mrf.mxu1  ;;  %v2317_v31 = vsel %vm2061_vm13, %v1463_v8, %v2189_v16 }
 0x13c   : > { %v2256_v20 = vsel %vm2000_vm11, %v3918_v12, %v2128_v14  ;;  %vm1998_vm14 = vcmp.ge.f32.partialorder %v1210_v18, 0.0  ;;  %v2126_v21 = vmul.f32 0.2, %v1210_v18  ;;  %vm2062_vm15 = vcmp.ge.f32.partialorder %v1466_v19, 0.0 }
 0x13d   : > { %v3506_v23 = vpack.c.bf16 %v2256_v20, %v2255_v10  ;;  %v2320_v24 = vsel %vm2064_vm12, %v3982_v13, %v2192_v17  ;;  %v2190_v25 = vmul.f32 0.2, %v1466_v19  ;;  %v3921_v26 = vpop.f32.mrf.mxu0  ;;  %v3985_v27 = vpop.f32.mrf.mxu1 }
 0x13e   : > { %v3666_v28 = vpack.c.bf16 %v2320_v24, %v2319_v15  ;;  %v2254_v29 = vsel %vm1998_vm14, %v1210_v18, %v2126_v21  ;;  %vm2003_vm0 = vcmp.ge.f32.partialorder %v3921_v26, 0.0  ;;  %v2131_v30 = vmul.f32 0.2, %v3921_v26 }
 0x13f   : > { %3746 = vst [vmem:[%s4279_s8 + $0x98] sm:$0xff] %v3506_v23   ;;  %v3501_v32 = vpack.c.bf16 %v2254_v29, %v2253_v22  ;;  %v2318_v33 = vsel %vm2062_vm15, %v1466_v19, %v2190_v25  ;;  %v2195_v34 = vmul.f32 0.2, %v3985_v27  ;;  %v1223_v35 = vpop.f32.mrf.mxu0  ;;  %v1479_v36 = vpop.f32.mrf.mxu1  ;;  %vm2067_vm1 = vcmp.ge.f32.partialorder %v3985_v27, 0.0 }
 0x140   : > { %3778 = vst [vmem:[%s4279_s8 + $0x198] sm:$0xff] %v3666_v28   ;;  %v3661_v37 = vpack.c.bf16 %v2318_v33, %v2317_v31  ;;  %v2259_v38 = vsel %vm2003_vm0, %v3921_v26, %v2131_v30  ;;  %v2129_v39 = vmul.f32 0.2, %v1223_v35  ;;  %vm2001_vm2 = vcmp.ge.f32.partialorder %v1223_v35, 0.0 }
 0x141   : > { %3745 = vst [vmem:[%s4279_s8 + $0x90] sm:$0xff] %v3501_v32   ;;  %v3922_v40 = vpop.f32.mrf.mxu0  ;;  %v3986_v41 = vpop.f32.mrf.mxu1  ;;  %v2323_v43 = vsel %vm2067_vm1, %v3985_v27, %v2195_v34  ;;  %vm2065_vm5 = vcmp.ge.f32.partialorder %v1479_v36, 0.0  ;;  %v2193_v44 = vmul.f32 0.2, %v1479_v36 }
 0x142   : > { %3777 = vst [vmem:[%s4279_s8 + $0x190] sm:$0xff] %v3661_v37   ;;  %vm2004_vm3 = vcmp.ge.f32.partialorder %v3922_v40, 0.0  ;;  %v2132_v42 = vmul.f32 0.2, %v3922_v40  ;;  %vm2068_vm4 = vcmp.ge.f32.partialorder %v3986_v41, 0.0  ;;  %v2257_v50 = vsel %vm2001_vm2, %v1223_v35, %v2129_v39 }
 0x143   : > { %v2196_v45 = vmul.f32 0.2, %v3986_v41  ;;  %v1226_v46 = vpop.f32.mrf.mxu0  ;;  %v1482_v47 = vpop.f32.mrf.mxu1  ;;  %v2321_v59 = vsel %vm2065_vm5, %v1479_v36, %v2193_v44 }
 0x144   : > { %v2260_v48 = vsel %vm2004_vm3, %v3922_v40, %v2132_v42  ;;  %vm2002_vm6 = vcmp.ge.f32.partialorder %v1226_v46, 0.0  ;;  %v2130_v49 = vmul.f32 0.2, %v1226_v46  ;;  %vm2066_vm7 = vcmp.ge.f32.partialorder %v1482_v47, 0.0 }
 0x145   : > { %v3516_v51 = vpack.c.bf16 %v2260_v48, %v2259_v38  ;;  %v2324_v52 = vsel %vm2068_vm4, %v3986_v41, %v2196_v45  ;;  %v2194_v53 = vmul.f32 0.2, %v1482_v47  ;;  %v3925_v54 = vpop.f32.mrf.mxu0  ;;  %v3989_v55 = vpop.f32.mrf.mxu1 }
 0x146   : > { %v3676_v56 = vpack.c.bf16 %v2324_v52, %v2323_v43  ;;  %v2258_v57 = vsel %vm2002_vm6, %v1226_v46, %v2130_v49  ;;  %vm2007_vm8 = vcmp.ge.f32.partialorder %v3925_v54, 0.0  ;;  %v2135_v58 = vmul.f32 0.2, %v3925_v54 }
 0x147   : > { %3748 = vst [vmem:[%s4279_s8 + $0xa8] sm:$0xff] %v3516_v51   ;;  %v3511_v60 = vpack.c.bf16 %v2258_v57, %v2257_v50  ;;  %v2322_v61 = vsel %vm2066_vm7, %v1482_v47, %v2194_v53  ;;  %v2199_v62 = vmul.f32 0.2, %v3989_v55  ;;  %v1239_v63 = vpop.f32.mrf.mxu0  ;;  %v1495_v0 = vpop.f32.mrf.mxu1  ;;  %vm2071_vm9 = vcmp.ge.f32.partialorder %v3989_v55, 0.0 }
 0x148   : > { %3780 = vst [vmem:[%s4279_s8 + $0x1a8] sm:$0xff] %v3676_v56   ;;  %v3671_v1 = vpack.c.bf16 %v2322_v61, %v2321_v59  ;;  %v2263_v2 = vsel %vm2007_vm8, %v3925_v54, %v2135_v58  ;;  %v2133_v3 = vmul.f32 0.2, %v1239_v63  ;;  %vm2005_vm10 = vcmp.ge.f32.partialorder %v1239_v63, 0.0 }
 0x149   : > { %3747 = vst [vmem:[%s4279_s8 + $0xa0] sm:$0xff] %v3511_v60   ;;  %v3926_v4 = vpop.f32.mrf.mxu0  ;;  %v3990_v5 = vpop.f32.mrf.mxu1  ;;  %v2327_v7 = vsel %vm2071_vm9, %v3989_v55, %v2199_v62  ;;  %vm2069_vm13 = vcmp.ge.f32.partialorder %v1495_v0, 0.0  ;;  %v2197_v8 = vmul.f32 0.2, %v1495_v0 }
 0x14a   : > { %3779 = vst [vmem:[%s4279_s8 + $0x1a0] sm:$0xff] %v3671_v1   ;;  %vm2008_vm11 = vcmp.ge.f32.partialorder %v3926_v4, 0.0  ;;  %v2136_v6 = vmul.f32 0.2, %v3926_v4  ;;  %vm2072_vm12 = vcmp.ge.f32.partialorder %v3990_v5, 0.0  ;;  %v2261_v14 = vsel %vm2005_vm10, %v1239_v63, %v2133_v3 }
 0x14b   : > { %v2200_v9 = vmul.f32 0.2, %v3990_v5  ;;  %v1242_v10 = vpop.f32.mrf.mxu0  ;;  %v1498_v11 = vpop.f32.mrf.mxu1  ;;  %v2325_v23 = vsel %vm2069_vm13, %v1495_v0, %v2197_v8 }
 0x14c   : > { %v2264_v12 = vsel %vm2008_vm11, %v3926_v4, %v2136_v6  ;;  %vm2006_vm14 = vcmp.ge.f32.partialorder %v1242_v10, 0.0  ;;  %v2134_v13 = vmul.f32 0.2, %v1242_v10  ;;  %vm2070_vm15 = vcmp.ge.f32.partialorder %v1498_v11, 0.0 }
 0x14d   : > { %v3526_v15 = vpack.c.bf16 %v2264_v12, %v2263_v2  ;;  %v2328_v16 = vsel %vm2072_vm12, %v3990_v5, %v2200_v9  ;;  %v2198_v17 = vmul.f32 0.2, %v1498_v11  ;;  %v3929_v18 = vpop.f32.mrf.mxu0  ;;  %v3993_v19 = vpop.f32.mrf.mxu1 }
 0x14e   : > { %v3686_v20 = vpack.c.bf16 %v2328_v16, %v2327_v7  ;;  %v2262_v21 = vsel %vm2006_vm14, %v1242_v10, %v2134_v13  ;;  %vm2011_vm0 = vcmp.ge.f32.partialorder %v3929_v18, 0.0  ;;  %v2139_v22 = vmul.f32 0.2, %v3929_v18 }
 0x14f   : > { %3750 = vst [vmem:[%s4279_s8 + $0xb8] sm:$0xff] %v3526_v15   ;;  %v3521_v24 = vpack.c.bf16 %v2262_v21, %v2261_v14  ;;  %v2326_v25 = vsel %vm2070_vm15, %v1498_v11, %v2198_v17  ;;  %v2203_v26 = vmul.f32 0.2, %v3993_v19  ;;  %v1255_v27 = vpop.f32.mrf.mxu0  ;;  %v1511_v28 = vpop.f32.mrf.mxu1  ;;  %vm2075_vm1 = vcmp.ge.f32.partialorder %v3993_v19, 0.0 }
 0x150   : > { %3782 = vst [vmem:[%s4279_s8 + $0x1b8] sm:$0xff] %v3686_v20   ;;  %v3681_v29 = vpack.c.bf16 %v2326_v25, %v2325_v23  ;;  %v2267_v30 = vsel %vm2011_vm0, %v3929_v18, %v2139_v22  ;;  %v2137_v31 = vmul.f32 0.2, %v1255_v27  ;;  %vm2009_vm2 = vcmp.ge.f32.partialorder %v1255_v27, 0.0 }
 0x151   : > { %3749 = vst [vmem:[%s4279_s8 + $0xb0] sm:$0xff] %v3521_v24   ;;  %v3930_v32 = vpop.f32.mrf.mxu0  ;;  %v3994_v33 = vpop.f32.mrf.mxu1  ;;  %v2331_v35 = vsel %vm2075_vm1, %v3993_v19, %v2203_v26  ;;  %vm2073_vm5 = vcmp.ge.f32.partialorder %v1511_v28, 0.0  ;;  %v2201_v36 = vmul.f32 0.2, %v1511_v28 }
 0x152   : > { %3781 = vst [vmem:[%s4279_s8 + $0x1b0] sm:$0xff] %v3681_v29   ;;  %vm2012_vm3 = vcmp.ge.f32.partialorder %v3930_v32, 0.0  ;;  %v2140_v34 = vmul.f32 0.2, %v3930_v32  ;;  %vm2076_vm4 = vcmp.ge.f32.partialorder %v3994_v33, 0.0  ;;  %v2265_v42 = vsel %vm2009_vm2, %v1255_v27, %v2137_v31 }
 0x153   : > { %v2204_v37 = vmul.f32 0.2, %v3994_v33  ;;  %v1258_v38 = vpop.f32.mrf.mxu0  ;;  %v1514_v39 = vpop.f32.mrf.mxu1  ;;  %v2329_v51 = vsel %vm2073_vm5, %v1511_v28, %v2201_v36 }
 0x154   : > { %v2268_v40 = vsel %vm2012_vm3, %v3930_v32, %v2140_v34  ;;  %vm2010_vm6 = vcmp.ge.f32.partialorder %v1258_v38, 0.0  ;;  %v2138_v41 = vmul.f32 0.2, %v1258_v38  ;;  %vm2074_vm7 = vcmp.ge.f32.partialorder %v1514_v39, 0.0 }
 0x155   : > { %v3536_v43 = vpack.c.bf16 %v2268_v40, %v2267_v30  ;;  %v2332_v44 = vsel %vm2076_vm4, %v3994_v33, %v2204_v37  ;;  %v2202_v45 = vmul.f32 0.2, %v1514_v39  ;;  %v3933_v46 = vpop.f32.mrf.mxu0  ;;  %v3997_v47 = vpop.f32.mrf.mxu1 }
 0x156   : > { %v3696_v48 = vpack.c.bf16 %v2332_v44, %v2331_v35  ;;  %v2266_v49 = vsel %vm2010_vm6, %v1258_v38, %v2138_v41  ;;  %vm2015_vm8 = vcmp.ge.f32.partialorder %v3933_v46, 0.0  ;;  %v2143_v50 = vmul.f32 0.2, %v3933_v46 }
 0x157   : > { %3752 = vst [vmem:[%s4279_s8 + $0xc8] sm:$0xff] %v3536_v43   ;;  %v3531_v52 = vpack.c.bf16 %v2266_v49, %v2265_v42  ;;  %v2330_v53 = vsel %vm2074_vm7, %v1514_v39, %v2202_v45  ;;  %v2207_v54 = vmul.f32 0.2, %v3997_v47  ;;  %v1271_v55 = vpop.f32.mrf.mxu0  ;;  %v1527_v56 = vpop.f32.mrf.mxu1  ;;  %vm2079_vm9 = vcmp.ge.f32.partialorder %v3997_v47, 0.0 }
 0x158   : > { %3784 = vst [vmem:[%s4279_s8 + $0x1c8] sm:$0xff] %v3696_v48   ;;  %v3691_v57 = vpack.c.bf16 %v2330_v53, %v2329_v51  ;;  %v2271_v58 = vsel %vm2015_vm8, %v3933_v46, %v2143_v50  ;;  %v2141_v59 = vmul.f32 0.2, %v1271_v55  ;;  %vm2013_vm10 = vcmp.ge.f32.partialorder %v1271_v55, 0.0 }
 0x159   : > { %3751 = vst [vmem:[%s4279_s8 + $0xc0] sm:$0xff] %v3531_v52   ;;  %v3934_v60 = vpop.f32.mrf.mxu0  ;;  %v3998_v61 = vpop.f32.mrf.mxu1  ;;  %v2335_v63 = vsel %vm2079_vm9, %v3997_v47, %v2207_v54  ;;  %vm2077_vm13 = vcmp.ge.f32.partialorder %v1527_v56, 0.0  ;;  %v2205_v0 = vmul.f32 0.2, %v1527_v56 }
 0x15a   : > { %3783 = vst [vmem:[%s4279_s8 + $0x1c0] sm:$0xff] %v3691_v57   ;;  %vm2016_vm11 = vcmp.ge.f32.partialorder %v3934_v60, 0.0  ;;  %v2144_v62 = vmul.f32 0.2, %v3934_v60  ;;  %vm2080_vm12 = vcmp.ge.f32.partialorder %v3998_v61, 0.0  ;;  %v2269_v6 = vsel %vm2013_vm10, %v1271_v55, %v2141_v59 }
 0x15b   : > { %v2208_v1 = vmul.f32 0.2, %v3998_v61  ;;  %v1274_v2 = vpop.f32.mrf.mxu0  ;;  %v1530_v3 = vpop.f32.mrf.mxu1  ;;  %v2333_v15 = vsel %vm2077_vm13, %v1527_v56, %v2205_v0 }
 0x15c   : > { %v2272_v4 = vsel %vm2016_vm11, %v3934_v60, %v2144_v62  ;;  %vm2014_vm14 = vcmp.ge.f32.partialorder %v1274_v2, 0.0  ;;  %v2142_v5 = vmul.f32 0.2, %v1274_v2  ;;  %vm2078_vm15 = vcmp.ge.f32.partialorder %v1530_v3, 0.0 }
 0x15d   : > { %v3546_v7 = vpack.c.bf16 %v2272_v4, %v2271_v58  ;;  %v2336_v8 = vsel %vm2080_vm12, %v3998_v61, %v2208_v1  ;;  %v2206_v9 = vmul.f32 0.2, %v1530_v3  ;;  %v3937_v10 = vpop.f32.mrf.mxu0  ;;  %v4001_v11 = vpop.f32.mrf.mxu1 }
 0x15e   : > { %v3706_v12 = vpack.c.bf16 %v2336_v8, %v2335_v63  ;;  %v2270_v13 = vsel %vm2014_vm14, %v1274_v2, %v2142_v5  ;;  %vm2019_vm0 = vcmp.ge.f32.partialorder %v3937_v10, 0.0  ;;  %v2147_v14 = vmul.f32 0.2, %v3937_v10 }
 0x15f   : > { %3754 = vst [vmem:[%s4279_s8 + $0xd8] sm:$0xff] %v3546_v7   ;;  %v3541_v16 = vpack.c.bf16 %v2270_v13, %v2269_v6  ;;  %v2334_v17 = vsel %vm2078_vm15, %v1530_v3, %v2206_v9  ;;  %v2211_v18 = vmul.f32 0.2, %v4001_v11  ;;  %v1287_v19 = vpop.f32.mrf.mxu0  ;;  %v1543_v20 = vpop.f32.mrf.mxu1  ;;  %vm2083_vm1 = vcmp.ge.f32.partialorder %v4001_v11, 0.0 }
 0x160   : > { %3786 = vst [vmem:[%s4279_s8 + $0x1d8] sm:$0xff] %v3706_v12   ;;  %v3701_v21 = vpack.c.bf16 %v2334_v17, %v2333_v15  ;;  %v2275_v22 = vsel %vm2019_vm0, %v3937_v10, %v2147_v14  ;;  %v2145_v23 = vmul.f32 0.2, %v1287_v19  ;;  %vm2017_vm2 = vcmp.ge.f32.partialorder %v1287_v19, 0.0 }
 0x161   : > { %3753 = vst [vmem:[%s4279_s8 + $0xd0] sm:$0xff] %v3541_v16   ;;  %v3938_v24 = vpop.f32.mrf.mxu0  ;;  %v4002_v25 = vpop.f32.mrf.mxu1  ;;  %v2339_v27 = vsel %vm2083_vm1, %v4001_v11, %v2211_v18  ;;  %vm2081_vm5 = vcmp.ge.f32.partialorder %v1543_v20, 0.0  ;;  %v2209_v28 = vmul.f32 0.2, %v1543_v20 }
 0x162   : > { %3785 = vst [vmem:[%s4279_s8 + $0x1d0] sm:$0xff] %v3701_v21   ;;  %vm2020_vm3 = vcmp.ge.f32.partialorder %v3938_v24, 0.0  ;;  %v2148_v26 = vmul.f32 0.2, %v3938_v24  ;;  %vm2084_vm4 = vcmp.ge.f32.partialorder %v4002_v25, 0.0  ;;  %v2273_v34 = vsel %vm2017_vm2, %v1287_v19, %v2145_v23 }
 0x163   : > { %v2212_v29 = vmul.f32 0.2, %v4002_v25  ;;  %v1290_v30 = vpop.f32.mrf.mxu0  ;;  %v1546_v31 = vpop.f32.mrf.mxu1  ;;  %v2337_v43 = vsel %vm2081_vm5, %v1543_v20, %v2209_v28 }
 0x164   : > { %v2276_v32 = vsel %vm2020_vm3, %v3938_v24, %v2148_v26  ;;  %vm2018_vm6 = vcmp.ge.f32.partialorder %v1290_v30, 0.0  ;;  %v2146_v33 = vmul.f32 0.2, %v1290_v30  ;;  %vm2082_vm7 = vcmp.ge.f32.partialorder %v1546_v31, 0.0 }
 0x165   : > { %v3556_v35 = vpack.c.bf16 %v2276_v32, %v2275_v22  ;;  %v2340_v36 = vsel %vm2084_vm4, %v4002_v25, %v2212_v29  ;;  %v2210_v37 = vmul.f32 0.2, %v1546_v31  ;;  %v3941_v38 = vpop.f32.mrf.mxu0  ;;  %v4005_v39 = vpop.f32.mrf.mxu1 }
 0x166   : > { %v3716_v40 = vpack.c.bf16 %v2340_v36, %v2339_v27  ;;  %v2274_v41 = vsel %vm2018_vm6, %v1290_v30, %v2146_v33  ;;  %vm2023_vm8 = vcmp.ge.f32.partialorder %v3941_v38, 0.0  ;;  %v2151_v42 = vmul.f32 0.2, %v3941_v38 }
 0x167   : > { %3756 = vst [vmem:[%s4279_s8 + $0xe8] sm:$0xff] %v3556_v35   ;;  %v3551_v44 = vpack.c.bf16 %v2274_v41, %v2273_v34  ;;  %v2338_v45 = vsel %vm2082_vm7, %v1546_v31, %v2210_v37  ;;  %v1303_v46 = vpop.f32.mrf.mxu0  ;;  %v1559_v47 = vpop.f32.mrf.mxu1  ;;  %vm2087_vm9 = vcmp.ge.f32.partialorder %v4005_v39, 0.0  ;;  %v2215_v50 = vmul.f32 0.2, %v4005_v39 }
 0x168   : > { %3788 = vst [vmem:[%s4279_s8 + $0x1e8] sm:$0xff] %v3716_v40   ;;  %v3711_v48 = vpack.c.bf16 %v2338_v45, %v2337_v43  ;;  %v2279_v49 = vsel %vm2023_vm8, %v3941_v38, %v2151_v42  ;;  %v2149_v53 = vmul.f32 0.2, %v1303_v46  ;;  %vm2021_vm12 = vcmp.ge.f32.partialorder %v1303_v46, 0.0 }
 0x169   : > { %3755 = vst [vmem:[%s4279_s8 + $0xe0] sm:$0xff] %v3551_v44   ;;  %v3942_v51 = vpop.f32.mrf.mxu0  ;;  %v4006_v52 = vpop.f32.mrf.mxu1  ;;  %vm2085_vm13 = vcmp.ge.f32.partialorder %v1559_v47, 0.0  ;;  %v2213_v55 = vmul.f32 0.2, %v1559_v47  ;;  %v2343_v61 = vsel %vm2087_vm9, %v4005_v39, %v2215_v50 }
 0x16a   : > { %3787 = vst [vmem:[%s4279_s8 + $0x1e0] sm:$0xff] %v3711_v48   ;;  %vm2024_vm10 = vcmp.ge.f32.partialorder %v3942_v51, 0.0  ;;  %v2152_v54 = vmul.f32 0.2, %v3942_v51  ;;  %vm2088_vm11 = vcmp.ge.f32.partialorder %v4006_v52, 0.0  ;;  %v2277_v1 = vsel %vm2021_vm12, %v1303_v46, %v2149_v53 }
 0x16b   : > { %v2216_v56 = vmul.f32 0.2, %v4006_v52  ;;  %v1306_v57 = vpop.f32.mrf.mxu0  ;;  %v1562_v58 = vpop.f32.mrf.mxu1  ;;  %v2341_v4 = vsel %vm2085_vm13, %v1559_v47, %v2213_v55 }
 0x16c   : > { %v2280_v59 = vsel %vm2024_vm10, %v3942_v51, %v2152_v54  ;;  %vm2022_vm14 = vcmp.ge.f32.partialorder %v1306_v57, 0.0  ;;  %v2150_v60 = vmul.f32 0.2, %v1306_v57  ;;  %vm2086_vm15 = vcmp.ge.f32.partialorder %v1562_v58, 0.0 }
 0x16d   : > { %v3566_v62 = vpack.c.bf16 %v2280_v59, %v2279_v49  ;;  %v2344_v63 = vsel %vm2088_vm11, %v4006_v52, %v2216_v56  ;;  %v2214_v0 = vmul.f32 0.2, %v1562_v58 }
 0x16e   : > { %v3726_v2 = vpack.c.bf16 %v2344_v63, %v2343_v61  ;;  %v2278_v3 = vsel %vm2022_vm14, %v1306_v57, %v2150_v60 }
 0x16f   : > { %3758 = vst [vmem:[%s4279_s8 + $0xf8] sm:$0xff] %v3566_v62   ;;  %v3561_v5 = vpack.c.bf16 %v2278_v3, %v2277_v1  ;;  %v2342_v6 = vsel %vm2086_vm15, %v1562_v58, %v2214_v0 }
 0x170   : > { %3790 = vst [vmem:[%s4279_s8 + $0x1f8] sm:$0xff] %v3726_v2   ;;  %v3721_v7 = vpack.c.bf16 %v2342_v6, %v2341_v4 }
 0x171   : > { %3757 = vst [vmem:[%s4279_s8 + $0xf0] sm:$0xff] %v3561_v5  }
 0x172   : > { %3789 = vst [vmem:[%s4279_s8 + $0x1f0] sm:$0xff] %v3721_v7  }
 0x173 PF: > { %s12_s11 = sadd.s32 1, %s4141_s11   ;;  %s4374_s9 = smov %s4137_s10 }
 0x174   : > { %p9_p5 = scmp.ge.s32.totalorder %s12_s11, 4   ;;  %s4375_s10 = smov %s4377_s12 }
 0x176   :  { %11 = sbr.rel (!%p9_p5) target bundleno = 2 (0x2), region = 69 }

// kernel: discriminator_forward.5
= control target key start
LH: loop header
LB: loop body
LE: loop exit
PB: predicated region body
PF: predicated region fallthrough
CT: control target
= control target key end

     0   :  { %v2019_v42 = vmov 0.0   ;;  %s2457_s1 = inlined_call_operand.vmem [shape: bf16[128,128], index: 1, kind: input, shape index: {}]   ;;  %s2458_s0 = inlined_call_operand.vmem [shape: bf16[512,128], index: 0, kind: input, shape index: {}]   ;;  %s2459_s3 = inlined_call_operand.vmem [shape: f32[8,128], index: 3, kind: output, shape index: {1}]   ;;  %s2460_s2 = inlined_call_operand.vmem [shape: bf16[512,128], index: 2, kind: output, shape index: {0}]  }
   0x1   :  { %v1979_v0 = vld [vmem:[%s2457_s1 + $0x38] sm:$0xff]   ;;  %v1980_v1 = vld [vmem:[%s2457_s1 + $0x30] sm:$0xff]   ;;  %v1981_v2 = vld [vmem:[%s2457_s1 + $0x28] sm:$0xff]   ;;  %1270 = vst [vmem:[%s2459_s3] sm:$0xff] %v2019_v42 }
   0x2   :  { %1882 = vmatprep.subr.bf16.mxu0 %v1979_v0  ;;  %1962 = vmatprep.subr.bf16.mxu1 %v1979_v0  ;;  %v1982_v3 = vld [vmem:[%s2457_s1 + $0x20] sm:$0xff]   ;;  %v1983_v5 = vld [vmem:[%s2457_s1 + $0x18] sm:$0xff]   ;;  %v1984_v6 = vld [vmem:[%s2457_s1 + $0x10] sm:$0xff]  }
   0x3   :  { %1883 = vmatpush3.bf16.msra.mxu0 %v1979_v0  ;;  %1970 = vmatpush3.bf16.msra.mxu1 %v1979_v0  ;;  %v1987_v4 = vld [vmem:[%s2458_s0] sm:$0xff]   ;;  %v1985_v7 = vld [vmem:[%s2457_s1 + $0x8] sm:$0xff]   ;;  %v1989_v11 = vld [vmem:[%s2458_s0 + $0x10] sm:$0xff]  }
   0x4   :  { %1884 = vmatprep.subr.bf16.mxu0 %v1980_v1  ;;  %1963 = vmatprep.subr.bf16.mxu1 %v1980_v1  ;;  %v1986_v8 = vld [vmem:[%s2457_s1] sm:$0xff]   ;;  %v1988_v10 = vld [vmem:[%s2458_s0 + $0x8] sm:$0xff]   ;;  %v2005_v13 = vld [vmem:[%s2458_s0 + $0x90] sm:$0xff]  }
   0x5   :  { %1898 = vmatprep.mubr.bf16.mxu0 %v1987_v4  ;;  %v2003_v9 = vld [vmem:[%s2458_s0 + $0x80] sm:$0xff]   ;;  %v2004_v12 = vld [vmem:[%s2458_s0 + $0x88] sm:$0xff]   ;;  %v1990_v14 = vld [vmem:[%s2458_s0 + $0x18] sm:$0xff]  }
   0x6   :  { %1930 = vmatprep.mubr.bf16.mxu1 %v2003_v9  ;;  %v1991_v15 = vld [vmem:[%s2458_s0 + $0x20] sm:$0xff]   ;;  %v2006_v16 = vld [vmem:[%s2458_s0 + $0x98] sm:$0xff]   ;;  %v1992_v18 = vld [vmem:[%s2458_s0 + $0x28] sm:$0xff]  }
   0x7   :  { %1885 = vmatpush3.bf16.msra.mxu0 %v1980_v1  ;;  %1971 = vmatpush3.bf16.msra.mxu1 %v1980_v1  ;;  %v2007_v17 = vld [vmem:[%s2458_s0 + $0xa0] sm:$0xff]   ;;  %v2008_v19 = vld [vmem:[%s2458_s0 + $0xa8] sm:$0xff]   ;;  %v1993_v20 = vld [vmem:[%s2458_s0 + $0x30] sm:$0xff]  }
   0x8   :  { %1886 = vmatprep.subr.bf16.mxu0 %v1981_v2  ;;  %1964 = vmatprep.subr.bf16.mxu1 %v1981_v2  ;;  %v2009_v21 = vld [vmem:[%s2458_s0 + $0xb0] sm:$0xff]   ;;  %v1994_v22 = vld [vmem:[%s2458_s0 + $0x38] sm:$0xff]   ;;  %v1995_v24 = vld [vmem:[%s2458_s0 + $0x40] sm:$0xff]  }
   0x9   :  { %v2010_v23 = vld [vmem:[%s2458_s0 + $0xb8] sm:$0xff]   ;;  %v2011_v25 = vld [vmem:[%s2458_s0 + $0xc0] sm:$0xff]   ;;  %v1996_v26 = vld [vmem:[%s2458_s0 + $0x48] sm:$0xff]  }
   0xa   :  { %v2012_v27 = vld [vmem:[%s2458_s0 + $0xc8] sm:$0xff]   ;;  %v1997_v28 = vld [vmem:[%s2458_s0 + $0x50] sm:$0xff]   ;;  %v1998_v30 = vld [vmem:[%s2458_s0 + $0x58] sm:$0xff]  }
   0xb   :  { %1887 = vmatpush3.bf16.msra.mxu0 %v1981_v2  ;;  %1972 = vmatpush3.bf16.msra.mxu1 %v1981_v2  ;;  %v2013_v29 = vld [vmem:[%s2458_s0 + $0xd0] sm:$0xff]   ;;  %v2014_v31 = vld [vmem:[%s2458_s0 + $0xd8] sm:$0xff]   ;;  %v1999_v32 = vld [vmem:[%s2458_s0 + $0x60] sm:$0xff]  }
   0xc   :  { %1888 = vmatprep.subr.bf16.mxu0 %v1982_v3  ;;  %1965 = vmatprep.subr.bf16.mxu1 %v1982_v3  ;;  %v2015_v33 = vld [vmem:[%s2458_s0 + $0xe0] sm:$0xff]   ;;  %v2000_v34 = vld [vmem:[%s2458_s0 + $0x68] sm:$0xff]   ;;  %v2001_v36 = vld [vmem:[%s2458_s0 + $0x70] sm:$0xff]  }
   0xd   :  { %v2016_v35 = vld [vmem:[%s2458_s0 + $0xe8] sm:$0xff]   ;;  %v2017_v37 = vld [vmem:[%s2458_s0 + $0xf0] sm:$0xff]   ;;  %v2002_v38 = vld [vmem:[%s2458_s0 + $0x78] sm:$0xff]  }
   0xe   :  { %v2018_v39 = vld [vmem:[%s2458_s0 + $0xf8] sm:$0xff]  }
   0xf   :  { %1889 = vmatpush3.bf16.msra.mxu0 %v1982_v3  ;;  %1973 = vmatpush3.bf16.msra.mxu1 %v1982_v3 }
  0x10   :  { %1890 = vmatprep.subr.bf16.mxu0 %v1983_v5  ;;  %1966 = vmatprep.subr.bf16.mxu1 %v1983_v5 }
  0x13   :  { %1891 = vmatpush3.bf16.msra.mxu0 %v1983_v5  ;;  %1974 = vmatpush3.bf16.msra.mxu1 %v1983_v5 }
  0x14   :  { %1892 = vmatprep.subr.bf16.mxu0 %v1984_v6  ;;  %1967 = vmatprep.subr.bf16.mxu1 %v1984_v6 }
  0x17   :  { %1893 = vmatpush3.bf16.msra.mxu0 %v1984_v6  ;;  %1975 = vmatpush3.bf16.msra.mxu1 %v1984_v6 }
  0x18   :  { %1894 = vmatprep.subr.bf16.mxu0 %v1985_v7  ;;  %1968 = vmatprep.subr.bf16.mxu1 %v1985_v7 }
  0x1b   :  { %1895 = vmatpush3.bf16.msra.mxu0 %v1985_v7  ;;  %1976 = vmatpush3.bf16.msra.mxu1 %v1985_v7 }
  0x1c   :  { %1896 = vmatprep.subr.bf16.mxu0 %v1986_v8  ;;  %1969 = vmatprep.subr.bf16.mxu1 %v1986_v8 }
  0x1f   :  { %1897 = vmatpush3.bf16.msra.mxu0 %v1986_v8  ;;  %1977 = vmatpush3.bf16.msra.mxu1 %v1986_v8 }
  0x22   :  { %1899 = vmatmul.mubr.bf16.vlgmr.msra.gmra.mxu0 %v1988_v10  ;;  %1931 = vmatmul.mubr.bf16.vlgmr.msra.gmra.mxu1 %v2004_v12 }
  0x23   :  { %1902 = vmatprep.mubr.bf16.mxu0 %v1989_v11  ;;  %1934 = vmatprep.mubr.bf16.mxu1 %v2005_v13 }
  0x2a   :  { %1903 = vmatmul.mubr.bf16.gmra.mxu0 %v1990_v14  ;;  %1935 = vmatmul.mubr.bf16.gmra.mxu1 %v2006_v16 }
  0x2b   :  { %1906 = vmatprep.mubr.bf16.mxu0 %v1991_v15  ;;  %1938 = vmatprep.mubr.bf16.mxu1 %v2007_v17 }
  0x32   :  { %1907 = vmatmul.mubr.bf16.gmra.mxu0 %v1992_v18  ;;  %1939 = vmatmul.mubr.bf16.gmra.mxu1 %v2008_v19 }
  0x33   :  { %1910 = vmatprep.mubr.bf16.mxu0 %v1993_v20  ;;  %1942 = vmatprep.mubr.bf16.mxu1 %v2009_v21 }
  0x3a   :  { %1911 = vmatmul.mubr.bf16.gmra.mxu0 %v1994_v22  ;;  %1943 = vmatmul.mubr.bf16.gmra.mxu1 %v2010_v23 }
  0x3b   :  { %1914 = vmatprep.mubr.bf16.mxu0 %v1995_v24  ;;  %1946 = vmatprep.mubr.bf16.mxu1 %v2011_v25 }
  0x42   :  { %1915 = vmatmul.mubr.bf16.gmra.mxu0 %v1996_v26  ;;  %1947 = vmatmul.mubr.bf16.gmra.mxu1 %v2012_v27 }
  0x43   :  { %1918 = vmatprep.mubr.bf16.mxu0 %v1997_v28  ;;  %1950 = vmatprep.mubr.bf16.mxu1 %v2013_v29 }
  0x4a   :  { %1919 = vmatmul.mubr.bf16.gmra.mxu0 %v1998_v30  ;;  %1951 = vmatmul.mubr.bf16.gmra.mxu1 %v2014_v31 }
  0x4b   :  { %1922 = vmatprep.mubr.bf16.mxu0 %v1999_v32  ;;  %1954 = vmatprep.mubr.bf16.mxu1 %v2015_v33 }
  0x52   :  { %1923 = vmatmul.mubr.bf16.gmra.mxu0 %v2000_v34  ;;  %1955 = vmatmul.mubr.bf16.gmra.mxu1 %v2016_v35 }
  0x53   :  { %1926 = vmatprep.mubr.bf16.mxu0 %v2001_v36  ;;  %1958 = vmatprep.mubr.bf16.mxu1 %v2017_v37 }
  0x5a   :  { %1927 = vmatmul.mubr.bf16.gmra.mxu0 %v2002_v38  ;;  %1959 = vmatmul.mubr.bf16.gmra.mxu1 %v2018_v39 }
  0xe2   :  { %v1900_v40 = vpop.f32.mrf.mxu0  ;;  %v2160_v41 = vpop.f32.mrf.mxu1 }
  0xe3   :  { %v1343_v58 = vmul.f32 %v1900_v40, %v1900_v40 }
  0xe4   :  { %v500_v43 = vpop.f32.mrf.mxu0  ;;  %v2165_v44 = vpop.f32.mrf.mxu1 }
  0xe5   :  { %v1341_v49 = vmul.f32 %v500_v43, %v500_v43 }
  0xe6   :  { %v1901_v45 = vpop.f32.mrf.mxu0  ;;  %v2167_v46 = vpop.f32.mrf.mxu1 }
  0xe7   :  { %v1659_v47 = vpack.c.bf16 %v1901_v45, %v1900_v40  ;;  %v1739_v48 = vpack.c.bf16 %v2167_v46, %v2160_v41  ;;  %v1344_v63 = vmul.f32 %v1901_v45, %v1901_v45 }
  0xe8   :  { %v503_v50 = vpop.f32.mrf.mxu0  ;;  %v2171_v51 = vpop.f32.mrf.mxu1 }
  0xe9   :  { %1811 = vst [vmem:[%s2460_s2 + $0x8] sm:$0xff] %v1659_v47   ;;  %v1654_v52 = vpack.c.bf16 %v503_v50, %v500_v43  ;;  %v1271_v53 = vadd.f32 %v503_v50, %v500_v43  ;;  %v1342_v54 = vmul.f32 %v503_v50, %v503_v50  ;;  %1827 = vst [vmem:[%s2460_s2 + $0x88] sm:$0xff] %v1739_v48  }
  0xea   :  { %v1734_v55 = vpack.c.bf16 %v2171_v51, %v2165_v44  ;;  %v1904_v56 = vpop.f32.mrf.mxu0  ;;  %v2181_v57 = vpop.f32.mrf.mxu1 }
  0xeb   :  { %1655 = vst [vmem:[%s2460_s2] sm:$0xff] %v1654_v52   ;;  %v1272_v59 = vadd.f32 %v1900_v40, %v1271_v53  ;;  %v1405_v60 = vadd.f32 %v1342_v54, %v1341_v49  ;;  %v1347_v18 = vmul.f32 %v1904_v56, %v1904_v56 }
  0xec   :  { %1826 = vst [vmem:[%s2460_s2 + $0x80] sm:$0xff] %v1734_v55   ;;  %v516_v61 = vpop.f32.mrf.mxu0  ;;  %v2189_v62 = vpop.f32.mrf.mxu1 }
  0xed   :  { %v1406_v0 = vadd.f32 %v1405_v60, %v1343_v58  ;;  %v1273_v1 = vadd.f32 %v1901_v45, %v1272_v59  ;;  %v1345_v5 = vmul.f32 %v516_v61, %v516_v61 }
  0xee   :  { %v1905_v2 = vpop.f32.mrf.mxu0  ;;  %v2191_v3 = vpop.f32.mrf.mxu1 }
  0xef   :  { %v1274_v4 = vadd.f32 %v1273_v1, %v516_v61  ;;  %v1407_v6 = vadd.f32 %v1406_v0, %v1344_v63  ;;  %v1669_v7 = vpack.c.bf16 %v1905_v2, %v1904_v56  ;;  %v1749_v9 = vpack.c.bf16 %v2191_v3, %v2181_v57 }
  0xf0   :  { %v519_v8 = vpop.f32.mrf.mxu0  ;;  %v2195_v10 = vpop.f32.mrf.mxu1  ;;  %v1348_v23 = vmul.f32 %v1905_v2, %v1905_v2 }
  0xf1   :  { %v1408_v11 = vadd.f32 %v1407_v6, %v1345_v5  ;;  %1813 = vst [vmem:[%s2460_s2 + $0x18] sm:$0xff] %v1669_v7   ;;  %v1664_v12 = vpack.c.bf16 %v519_v8, %v516_v61  ;;  %v1275_v13 = vadd.f32 %v1274_v4, %v519_v8  ;;  %v1346_v14 = vmul.f32 %v519_v8, %v519_v8 }
  0xf2   :  { %v1908_v15 = vpop.f32.mrf.mxu0  ;;  %1829 = vst [vmem:[%s2460_s2 + $0x98] sm:$0xff] %v1749_v9   ;;  %v1744_v16 = vpack.c.bf16 %v2195_v10, %v2189_v62  ;;  %v2205_v17 = vpop.f32.mrf.mxu1 }
  0xf3   :  { %1812 = vst [vmem:[%s2460_s2 + $0x10] sm:$0xff] %v1664_v12   ;;  %v1276_v19 = vadd.f32 %v1904_v56, %v1275_v13  ;;  %v1409_v20 = vadd.f32 %v1408_v11, %v1346_v14  ;;  %v1351_v43 = vmul.f32 %v1908_v15, %v1908_v15 }
  0xf4   :  { %v532_v21 = vpop.f32.mrf.mxu0  ;;  %1828 = vst [vmem:[%s2460_s2 + $0x90] sm:$0xff] %v1744_v16   ;;  %v2213_v22 = vpop.f32.mrf.mxu1 }
  0xf5   :  { %v1410_v24 = vadd.f32 %v1409_v20, %v1347_v18  ;;  %v1277_v25 = vadd.f32 %v1905_v2, %v1276_v19  ;;  %v1349_v29 = vmul.f32 %v532_v21, %v532_v21 }
  0xf6   :  { %v1909_v26 = vpop.f32.mrf.mxu0  ;;  %v2215_v27 = vpop.f32.mrf.mxu1 }
  0xf7   :  { %v1278_v28 = vadd.f32 %v1277_v25, %v532_v21  ;;  %v1411_v30 = vadd.f32 %v1410_v24, %v1348_v23  ;;  %v1679_v31 = vpack.c.bf16 %v1909_v26, %v1908_v15  ;;  %v1759_v33 = vpack.c.bf16 %v2215_v27, %v2205_v17 }
  0xf8   :  { %v535_v32 = vpop.f32.mrf.mxu0  ;;  %v2219_v34 = vpop.f32.mrf.mxu1  ;;  %v1352_v50 = vmul.f32 %v1909_v26, %v1909_v26 }
  0xf9   :  { %v1412_v35 = vadd.f32 %v1411_v30, %v1349_v29  ;;  %1815 = vst [vmem:[%s2460_s2 + $0x28] sm:$0xff] %v1679_v31   ;;  %v1674_v36 = vpack.c.bf16 %v535_v32, %v532_v21  ;;  %v1279_v37 = vadd.f32 %v1278_v28, %v535_v32  ;;  %v1350_v38 = vmul.f32 %v535_v32, %v535_v32 }
  0xfa   :  { %v1912_v39 = vpop.f32.mrf.mxu0  ;;  %1831 = vst [vmem:[%s2460_s2 + $0xa8] sm:$0xff] %v1759_v33   ;;  %v1754_v40 = vpack.c.bf16 %v2219_v34, %v2213_v22  ;;  %v2229_v42 = vpop.f32.mrf.mxu1 }
  0xfb   :  { %1814 = vst [vmem:[%s2460_s2 + $0x20] sm:$0xff] %v1674_v36   ;;  %v1280_v45 = vadd.f32 %v1908_v15, %v1279_v37  ;;  %v1413_v47 = vadd.f32 %v1412_v35, %v1350_v38  ;;  %v1355_v9 = vmul.f32 %v1912_v39, %v1912_v39 }
  0xfc   :  { %v548_v48 = vpop.f32.mrf.mxu0  ;;  %1830 = vst [vmem:[%s2460_s2 + $0xa0] sm:$0xff] %v1754_v40   ;;  %v2237_v49 = vpop.f32.mrf.mxu1 }
  0xfd   :  { %v1414_v52 = vadd.f32 %v1413_v47, %v1351_v43  ;;  %v1281_v53 = vadd.f32 %v1909_v26, %v1280_v45  ;;  %v1353_v58 = vmul.f32 %v548_v48, %v548_v48 }
  0xfe   :  { %v1913_v54 = vpop.f32.mrf.mxu0  ;;  %v2239_v55 = vpop.f32.mrf.mxu1 }
  0xff   :  { %v1282_v56 = vadd.f32 %v1281_v53, %v548_v48  ;;  %v1415_v59 = vadd.f32 %v1414_v52, %v1352_v50  ;;  %v1689_v60 = vpack.c.bf16 %v1913_v54, %v1912_v39  ;;  %v1769_v63 = vpack.c.bf16 %v2239_v55, %v2229_v42 }
 0x100   :  { %v551_v61 = vpop.f32.mrf.mxu0  ;;  %v2243_v0 = vpop.f32.mrf.mxu1  ;;  %v1356_v15 = vmul.f32 %v1913_v54, %v1913_v54 }
 0x101   :  { %v1416_v1 = vadd.f32 %v1415_v59, %v1353_v58  ;;  %1817 = vst [vmem:[%s2460_s2 + $0x38] sm:$0xff] %v1689_v60   ;;  %v1684_v2 = vpack.c.bf16 %v551_v61, %v548_v48  ;;  %v1283_v4 = vadd.f32 %v1282_v56, %v551_v61  ;;  %v1354_v5 = vmul.f32 %v551_v61, %v551_v61 }
 0x102   :  { %v1916_v6 = vpop.f32.mrf.mxu0  ;;  %1833 = vst [vmem:[%s2460_s2 + $0xb8] sm:$0xff] %v1769_v63   ;;  %v1764_v7 = vpack.c.bf16 %v2243_v0, %v2237_v49  ;;  %v2253_v8 = vpop.f32.mrf.mxu1 }
 0x103   :  { %1816 = vst [vmem:[%s2460_s2 + $0x30] sm:$0xff] %v1684_v2   ;;  %v1284_v11 = vadd.f32 %v1912_v39, %v1283_v4  ;;  %v1417_v12 = vadd.f32 %v1416_v1, %v1354_v5  ;;  %v1359_v38 = vmul.f32 %v1916_v6, %v1916_v6 }
 0x104   :  { %v564_v13 = vpop.f32.mrf.mxu0  ;;  %1832 = vst [vmem:[%s2460_s2 + $0xb0] sm:$0xff] %v1764_v7   ;;  %v2261_v14 = vpop.f32.mrf.mxu1 }
 0x105   :  { %v1418_v16 = vadd.f32 %v1417_v12, %v1355_v9  ;;  %v1285_v18 = vadd.f32 %v1913_v54, %v1284_v11  ;;  %v1357_v23 = vmul.f32 %v564_v13, %v564_v13 }
 0x106   :  { %v1917_v19 = vpop.f32.mrf.mxu0  ;;  %v2263_v20 = vpop.f32.mrf.mxu1 }
 0x107   :  { %v1286_v21 = vadd.f32 %v1285_v18, %v564_v13  ;;  %v1419_v24 = vadd.f32 %v1418_v16, %v1356_v15  ;;  %v1699_v25 = vpack.c.bf16 %v1917_v19, %v1916_v6  ;;  %v1779_v28 = vpack.c.bf16 %v2263_v20, %v2253_v8 }
 0x108   :  { %v567_v26 = vpop.f32.mrf.mxu0  ;;  %v2267_v29 = vpop.f32.mrf.mxu1  ;;  %v1360_v47 = vmul.f32 %v1917_v19, %v1917_v19 }
 0x109   :  { %v1420_v30 = vadd.f32 %v1419_v24, %v1357_v23  ;;  %1819 = vst [vmem:[%s2460_s2 + $0x48] sm:$0xff] %v1699_v25   ;;  %v1694_v31 = vpack.c.bf16 %v567_v26, %v564_v13  ;;  %v1287_v32 = vadd.f32 %v1286_v21, %v567_v26  ;;  %v1358_v33 = vmul.f32 %v567_v26, %v567_v26 }
 0x10a   :  { %v1920_v35 = vpop.f32.mrf.mxu0  ;;  %1835 = vst [vmem:[%s2460_s2 + $0xc8] sm:$0xff] %v1779_v28   ;;  %v1774_v36 = vpack.c.bf16 %v2267_v29, %v2261_v14  ;;  %v2277_v37 = vpop.f32.mrf.mxu1 }
 0x10b   :  { %1818 = vst [vmem:[%s2460_s2 + $0x40] sm:$0xff] %v1694_v31   ;;  %v1288_v39 = vadd.f32 %v1916_v6, %v1287_v32  ;;  %v1421_v40 = vadd.f32 %v1420_v30, %v1358_v33  ;;  %v1363_v11 = vmul.f32 %v1920_v35, %v1920_v35 }
 0x10c   :  { %v580_v43 = vpop.f32.mrf.mxu0  ;;  %1834 = vst [vmem:[%s2460_s2 + $0xc0] sm:$0xff] %v1774_v36   ;;  %v2285_v45 = vpop.f32.mrf.mxu1 }
 0x10d   :  { %v1422_v48 = vadd.f32 %v1421_v40, %v1359_v38  ;;  %v1289_v50 = vadd.f32 %v1917_v19, %v1288_v39  ;;  %v1361_v56 = vmul.f32 %v580_v43, %v580_v43 }
 0x10e   :  { %v1921_v52 = vpop.f32.mrf.mxu0  ;;  %v2287_v53 = vpop.f32.mrf.mxu1 }
 0x10f   :  { %v1290_v54 = vadd.f32 %v1289_v50, %v580_v43  ;;  %v1423_v58 = vadd.f32 %v1422_v48, %v1360_v47  ;;  %v1709_v59 = vpack.c.bf16 %v1921_v52, %v1920_v35  ;;  %v1789_v61 = vpack.c.bf16 %v2287_v53, %v2277_v37 }
 0x110   :  { %v583_v60 = vpop.f32.mrf.mxu0  ;;  %v2291_v63 = vpop.f32.mrf.mxu1  ;;  %v1364_v18 = vmul.f32 %v1921_v52, %v1921_v52 }
 0x111   :  { %v1424_v1 = vadd.f32 %v1423_v58, %v1361_v56  ;;  %1821 = vst [vmem:[%s2460_s2 + $0x58] sm:$0xff] %v1709_v59   ;;  %v1704_v2 = vpack.c.bf16 %v583_v60, %v580_v43  ;;  %v1291_v4 = vadd.f32 %v1290_v54, %v583_v60  ;;  %v1362_v5 = vmul.f32 %v583_v60, %v583_v60 }
 0x112   :  { %v1924_v6 = vpop.f32.mrf.mxu0  ;;  %1837 = vst [vmem:[%s2460_s2 + $0xd8] sm:$0xff] %v1789_v61   ;;  %v1784_v7 = vpack.c.bf16 %v2291_v63, %v2285_v45  ;;  %v2301_v9 = vpop.f32.mrf.mxu1 }
 0x113   :  { %1820 = vst [vmem:[%s2460_s2 + $0x50] sm:$0xff] %v1704_v2   ;;  %v1292_v12 = vadd.f32 %v1920_v35, %v1291_v4  ;;  %v1425_v13 = vadd.f32 %v1424_v1, %v1362_v5  ;;  %v1367_v48 = vmul.f32 %v1924_v6, %v1924_v6 }
 0x114   :  { %v596_v15 = vpop.f32.mrf.mxu0  ;;  %1836 = vst [vmem:[%s2460_s2 + $0xd0] sm:$0xff] %v1784_v7   ;;  %v2309_v16 = vpop.f32.mrf.mxu1 }
 0x115   :  { %v1426_v19 = vadd.f32 %v1425_v13, %v1363_v11  ;;  %v1293_v21 = vadd.f32 %v1921_v52, %v1292_v12  ;;  %v1365_v26 = vmul.f32 %v596_v15, %v596_v15 }
 0x116   :  { %v1925_v23 = vpop.f32.mrf.mxu0  ;;  %v2311_v24 = vpop.f32.mrf.mxu1 }
 0x117   :  { %v1294_v25 = vadd.f32 %v1293_v21, %v596_v15  ;;  %v1427_v28 = vadd.f32 %v1426_v19, %v1364_v18  ;;  %v1719_v30 = vpack.c.bf16 %v1925_v23, %v1924_v6  ;;  %v1799_v32 = vpack.c.bf16 %v2311_v24, %v2301_v9 }
 0x118   :  { %v599_v31 = vpop.f32.mrf.mxu0  ;;  %v2315_v33 = vpop.f32.mrf.mxu1  ;;  %v1368_v58 = vmul.f32 %v1925_v23, %v1925_v23 }
 0x119   :  { %v1428_v35 = vadd.f32 %v1427_v28, %v1365_v26  ;;  %1823 = vst [vmem:[%s2460_s2 + $0x68] sm:$0xff] %v1719_v30   ;;  %v1714_v36 = vpack.c.bf16 %v599_v31, %v596_v15  ;;  %v1295_v38 = vadd.f32 %v1294_v25, %v599_v31  ;;  %v1366_v39 = vmul.f32 %v599_v31, %v599_v31 }
 0x11a   :  { %v1928_v40 = vpop.f32.mrf.mxu0  ;;  %1839 = vst [vmem:[%s2460_s2 + $0xe8] sm:$0xff] %v1799_v32   ;;  %v1794_v43 = vpack.c.bf16 %v2315_v33, %v2309_v16  ;;  %v2325_v47 = vpop.f32.mrf.mxu1  ;;  %v1373_v32 = vmul.f32 %v2165_v44, %v2165_v44 }
 0x11b   :  { %1822 = vst [vmem:[%s2460_s2 + $0x60] sm:$0xff] %v1714_v36   ;;  %v1296_v50 = vadd.f32 %v1924_v6, %v1295_v38  ;;  %v1429_v52 = vadd.f32 %v1428_v35, %v1366_v39  ;;  %v1374_v39 = vmul.f32 %v2171_v51, %v2171_v51 }
 0x11c   :  { %v612_v54 = vpop.f32.mrf.mxu0  ;;  %1838 = vst [vmem:[%s2460_s2 + $0xe0] sm:$0xff] %v1794_v43   ;;  %v2333_v56 = vpop.f32.mrf.mxu1  ;;  %v1375_v43 = vmul.f32 %v2160_v41, %v2160_v41 }
 0x11d   :  { %v1430_v59 = vadd.f32 %v1429_v52, %v1367_v48  ;;  %v1297_v60 = vadd.f32 %v1925_v23, %v1296_v50  ;;  %v1369_v4 = vmul.f32 %v612_v54, %v612_v54  ;;  %v1371_v23 = vmul.f32 %v1928_v40, %v1928_v40 }
 0x11e   :  { %v1929_v61 = vpop.f32.mrf.mxu0  ;;  %v2335_v1 = vpop.f32.mrf.mxu1  ;;  %v1376_v52 = vmul.f32 %v2167_v46, %v2167_v46 }
 0x11f   :  { %v1298_v2 = vadd.f32 %v1297_v60, %v612_v54  ;;  %v1431_v5 = vadd.f32 %v1430_v59, %v1368_v58  ;;  %v1729_v7 = vpack.c.bf16 %v1929_v61, %v1928_v40  ;;  %v1809_v6 = vpack.c.bf16 %v2335_v1, %v2325_v47 }
 0x120   :  { %v615_v11 = vpop.f32.mrf.mxu0  ;;  %v2339_v12 = vpop.f32.mrf.mxu1  ;;  %v1372_v28 = vmul.f32 %v1929_v61, %v1929_v61  ;;  %v1377_v59 = vmul.f32 %v2189_v62, %v2189_v62 }
 0x121   :  { %v1432_v13 = vadd.f32 %v1431_v5, %v1369_v4  ;;  %1825 = vst [vmem:[%s2460_s2 + $0x78] sm:$0xff] %v1729_v7   ;;  %v1724_v15 = vpack.c.bf16 %v615_v11, %v612_v54  ;;  %v1299_v18 = vadd.f32 %v1298_v2, %v615_v11  ;;  %v1370_v19 = vmul.f32 %v615_v11, %v615_v11 }
 0x122   :  { %1841 = vst [vmem:[%s2460_s2 + $0xf8] sm:$0xff] %v1809_v6   ;;  %v1804_v21 = vpack.c.bf16 %v2339_v12, %v2333_v56  ;;  %v1378_v2 = vmul.f32 %v2195_v10, %v2195_v10  ;;  %v1381_v6 = vmul.f32 %v2213_v22, %v2213_v22 }
 0x123   :  { %1824 = vst [vmem:[%s2460_s2 + $0x70] sm:$0xff] %v1724_v15   ;;  %v1300_v25 = vadd.f32 %v1928_v40, %v1299_v18  ;;  %v1433_v26 = vadd.f32 %v1432_v13, %v1370_v19  ;;  %v1382_v18 = vmul.f32 %v2219_v34, %v2219_v34 }
 0x124   :  { %1840 = vst [vmem:[%s2460_s2 + $0xf0] sm:$0xff] %v1804_v21  }
 0x125   :  { %v1301_v30 = vadd.f32 %v1929_v61, %v1300_v25  ;;  %v1434_v31 = vadd.f32 %v1433_v26, %v1371_v23  ;;  %v1385_v26 = vmul.f32 %v2237_v49, %v2237_v49 }
 0x127   :  { %v1435_v35 = vadd.f32 %v1434_v31, %v1372_v28  ;;  %v1302_v36 = vadd.f32 %v1301_v30, %v2165_v44  ;;  %v1386_v31 = vmul.f32 %v2243_v0, %v2243_v0 }
 0x129   :  { %v1303_v38 = vadd.f32 %v1302_v36, %v2171_v51  ;;  %v1436_v40 = vadd.f32 %v1435_v35, %v1373_v32 }
 0x12b   :  { %v1304_v48 = vadd.f32 %v2160_v41, %v1303_v38  ;;  %v1437_v50 = vadd.f32 %v1436_v40, %v1374_v39  ;;  %v1379_v41 = vmul.f32 %v2181_v57, %v2181_v57  ;;  %v1389_v39 = vmul.f32 %v2261_v14, %v2261_v14 }
 0x12d   :  { %v1438_v54 = vadd.f32 %v1437_v50, %v1375_v43  ;;  %v1305_v58 = vadd.f32 %v2167_v46, %v1304_v48  ;;  %v1380_v46 = vmul.f32 %v2191_v3, %v2191_v3  ;;  %v1390_v48 = vmul.f32 %v2267_v29, %v2267_v29 }
 0x12f   :  { %v1306_v44 = vadd.f32 %v1305_v58, %v2189_v62  ;;  %v1439_v60 = vadd.f32 %v1438_v54, %v1376_v52 }
 0x131   :  { %v1440_v51 = vadd.f32 %v1439_v60, %v1377_v59  ;;  %v1307_v61 = vadd.f32 %v1306_v44, %v2195_v10  ;;  %v1393_v44 = vmul.f32 %v2285_v45, %v2285_v45 }
 0x133   :  { %v1308_v4 = vadd.f32 %v2181_v57, %v1307_v61  ;;  %v1441_v5 = vadd.f32 %v1440_v51, %v1378_v2  ;;  %v1383_v57 = vmul.f32 %v2205_v17, %v2205_v17  ;;  %v1394_v51 = vmul.f32 %v2291_v63, %v2291_v63 }
 0x135   :  { %v1442_v7 = vadd.f32 %v1441_v5, %v1379_v41  ;;  %v1309_v11 = vadd.f32 %v2191_v3, %v1308_v4  ;;  %v1384_v3 = vmul.f32 %v2215_v27, %v2215_v27  ;;  %v1397_v5 = vmul.f32 %v2309_v16, %v2309_v16 }
 0x137   :  { %v1310_v62 = vadd.f32 %v1309_v11, %v2213_v22  ;;  %v1443_v13 = vadd.f32 %v1442_v7, %v1380_v46  ;;  %v1398_v11 = vmul.f32 %v2315_v33, %v2315_v33 }
 0x139   :  { %v1444_v15 = vadd.f32 %v1443_v13, %v1381_v6  ;;  %v1311_v10 = vadd.f32 %v1310_v62, %v2219_v34 }
 0x13b   :  { %v1312_v19 = vadd.f32 %v2205_v17, %v1311_v10  ;;  %v1445_v21 = vadd.f32 %v1444_v15, %v1382_v18  ;;  %v1387_v17 = vmul.f32 %v2229_v42, %v2229_v42  ;;  %v1401_v10 = vmul.f32 %v2333_v56, %v2333_v56 }
 0x13d   :  { %v1446_v23 = vadd.f32 %v1445_v21, %v1383_v57  ;;  %v1313_v25 = vadd.f32 %v2215_v27, %v1312_v19  ;;  %v1388_v27 = vmul.f32 %v2239_v55, %v2239_v55  ;;  %v1402_v19 = vmul.f32 %v2339_v12, %v2339_v12 }
 0x13f   :  { %v1314_v22 = vadd.f32 %v1313_v25, %v2237_v49  ;;  %v1447_v28 = vadd.f32 %v1446_v23, %v1384_v3 }
 0x141   :  { %v1448_v30 = vadd.f32 %v1447_v28, %v1385_v26  ;;  %v1315_v34 = vadd.f32 %v1314_v22, %v2243_v0 }
 0x143   :  { %v1316_v32 = vadd.f32 %v2229_v42, %v1315_v34  ;;  %v1449_v35 = vadd.f32 %v1448_v30, %v1386_v31  ;;  %v1391_v42 = vmul.f32 %v2253_v8, %v2253_v8 }
 0x145   :  { %v1450_v36 = vadd.f32 %v1449_v35, %v1387_v17  ;;  %v1317_v38 = vadd.f32 %v2239_v55, %v1316_v32  ;;  %v1392_v55 = vmul.f32 %v2263_v20, %v2263_v20 }
 0x147   :  { %v1318_v49 = vadd.f32 %v1317_v38, %v2261_v14  ;;  %v1451_v40 = vadd.f32 %v1450_v36, %v1388_v27 }
 0x149   :  { %v1452_v43 = vadd.f32 %v1451_v40, %v1389_v39  ;;  %v1319_v0 = vadd.f32 %v1318_v49, %v2267_v29 }
 0x14b   :  { %v1320_v50 = vadd.f32 %v2253_v8, %v1319_v0  ;;  %v1453_v52 = vadd.f32 %v1452_v43, %v1390_v48  ;;  %v1395_v8 = vmul.f32 %v2277_v37, %v2277_v37 }
 0x14d   :  { %v1454_v54 = vadd.f32 %v1453_v52, %v1391_v42  ;;  %v1321_v58 = vadd.f32 %v2263_v20, %v1320_v50  ;;  %v1396_v20 = vmul.f32 %v2287_v53, %v2287_v53 }
 0x14f   :  { %v1322_v14 = vadd.f32 %v1321_v58, %v2285_v45  ;;  %v1455_v59 = vadd.f32 %v1454_v54, %v1392_v55 }
 0x151   :  { %v1456_v60 = vadd.f32 %v1455_v59, %v1393_v44  ;;  %v1323_v29 = vadd.f32 %v1322_v14, %v2291_v63 }
 0x153   :  { %v1324_v61 = vadd.f32 %v2277_v37, %v1323_v29  ;;  %v1457_v2 = vadd.f32 %v1456_v60, %v1394_v51  ;;  %v1399_v37 = vmul.f32 %v2301_v9, %v2301_v9 }
 0x155   :  { %v1458_v41 = vadd.f32 %v1457_v2, %v1395_v8  ;;  %v1325_v4 = vadd.f32 %v2287_v53, %v1324_v61  ;;  %v1400_v53 = vmul.f32 %v2311_v24, %v2311_v24 }
 0x157   :  { %v1326_v45 = vadd.f32 %v1325_v4, %v2309_v16  ;;  %v1459_v46 = vadd.f32 %v1458_v41, %v1396_v20 }
 0x159   :  { %v1460_v7 = vadd.f32 %v1459_v46, %v1397_v5  ;;  %v1327_v63 = vadd.f32 %v1326_v45, %v2315_v33 }
 0x15b   :  { %v1328_v62 = vadd.f32 %v2301_v9, %v1327_v63  ;;  %v1461_v6 = vadd.f32 %v1460_v7, %v1398_v11  ;;  %v1403_v9 = vmul.f32 %v2325_v47, %v2325_v47 }
 0x15d   :  { %v1462_v13 = vadd.f32 %v1461_v6, %v1399_v37  ;;  %v1329_v15 = vadd.f32 %v2311_v24, %v1328_v62  ;;  %v1404_v24 = vmul.f32 %v2335_v1, %v2335_v1 }
 0x15f   :  { %v1330_v16 = vadd.f32 %v1329_v15, %v2333_v56  ;;  %v1463_v18 = vadd.f32 %v1462_v13, %v1400_v53 }
 0x161   :  { %v1464_v57 = vadd.f32 %v1463_v18, %v1401_v10  ;;  %v1331_v33 = vadd.f32 %v1330_v16, %v2339_v12 }
 0x163   :  { %v1332_v21 = vadd.f32 %v2325_v47, %v1331_v33  ;;  %v1465_v3 = vadd.f32 %v1464_v57, %v1402_v19 }
 0x165   :  { %v1333_v23 = vadd.f32 %v2335_v1, %v1332_v21  ;;  %v1466_v25 = vadd.f32 %v1465_v3, %v1403_v9 }
 0x167   :  { %v1334_v56 = vrot.slane %v1333_v23, 4  ;;  %v1467_v22 = vadd.f32 %v1466_v25, %v1404_v24 }
 0x169   :  { %v1335_v26 = vadd.f32 %v1334_v56, %v1333_v23  ;;  %v1468_v28 = vrot.slane %v1467_v22, 4 }
 0x16b   :  { %v1336_v30 = vrot.slane %v1335_v26, 2  ;;  %v1469_v34 = vadd.f32 %v1468_v28, %v1467_v22 }
 0x16d   :  { %v1337_v31 = vadd.f32 %v1336_v30, %v1335_v26  ;;  %v1470_v12 = vrot.slane %v1469_v34, 2 }
 0x16f   :  { %v1338_v17 = vrot.slane %v1337_v31, 1  ;;  %v1471_v32 = vadd.f32 %v1470_v12, %v1469_v34 }
 0x171   :  { %v1339_v35 = vadd.f32 %v1338_v17, %v1337_v31  ;;  %v1472_v27 = vrot.slane %v1471_v32, 1 }
 0x173   :  { %1340 = vst [vmem:[%s2459_s3] sm:$0x1] %v1339_v35  ;;  %v1473_v47 = vadd.f32 %v1472_v27, %v1471_v32 }
 0x175   :  { %1474 = vst [vmem:[%s2459_s3 + $0x1] sm:$0x1] %v1473_v47 }

// kernel: discriminator_forward.6
= control target key start
LH: loop header
LB: loop body
LE: loop exit
PB: predicated region body
PF: predicated region fallthrough
CT: control target
= control target key end

     0   :  { %v803_v32 = vmov 0.0   ;;  %s977_s1 = inlined_call_operand.vmem [shape: bf16[256,128], index: 1, kind: input, shape index: {}]   ;;  %s978_s0 = inlined_call_operand.vmem [shape: bf16[128,256], index: 0, kind: input, shape index: {}]   ;;  %s979_s3 = inlined_call_operand.vmem [shape: f32[8,128], index: 3, kind: output, shape index: {1}]   ;;  %s980_s2 = inlined_call_operand.vmem [shape: bf16[128,128], index: 2, kind: output, shape index: {0}]  }
   0x1   :  { %v763_v0 = vld [vmem:[%s977_s1 + $0x78] sm:$0xff]   ;;  %v765_v2 = vld [vmem:[%s977_s1 + $0x70] sm:$0xff]   ;;  %v767_v4 = vld [vmem:[%s977_s1 + $0x68] sm:$0xff]   ;;  %502 = vst [vmem:[%s979_s3] sm:$0xff] %v803_v32 }
   0x2   :  { %v764_v1 = vld [vmem:[%s977_s1 + $0x38] sm:$0xff]   ;;  %682 = vmatprep.subr.bf16.mxu0 %v763_v0  ;;  %746 = vmatprep.subr.bf16.mxu1 %v763_v0  ;;  %v766_v3 = vld [vmem:[%s977_s1 + $0x30] sm:$0xff]   ;;  %v768_v5 = vld [vmem:[%s977_s1 + $0x28] sm:$0xff]  }
   0x3   :  { %683 = vmatpush3.bf16.msra.mxu0 %v764_v1  ;;  %754 = vmatpush3.bf16.msra.mxu1 %v764_v1  ;;  %v769_v6 = vld [vmem:[%s977_s1 + $0x60] sm:$0xff]   ;;  %v771_v8 = vld [vmem:[%s977_s1 + $0x58] sm:$0xff]   ;;  %v773_v10 = vld [vmem:[%s977_s1 + $0x50] sm:$0xff]  }
   0x4   :  { %684 = vmatprep.subr.bf16.mxu0 %v765_v2  ;;  %747 = vmatprep.subr.bf16.mxu1 %v765_v2  ;;  %v770_v7 = vld [vmem:[%s977_s1 + $0x20] sm:$0xff]   ;;  %v772_v9 = vld [vmem:[%s977_s1 + $0x18] sm:$0xff]   ;;  %v774_v12 = vld [vmem:[%s977_s1 + $0x10] sm:$0xff]  }
   0x5   :  { %v781_v11 = vld [vmem:[%s978_s0 + $0x4] ss:$8 sps:$4 sm:$0xff]   ;;  %v779_v18 = vld [vmem:[%s978_s0] ss:$8 sps:$4 sm:$0xff]   ;;  %v782_v20 = vld [vmem:[%s978_s0 + $0x14] ss:$8 sps:$4 sm:$0xff]  }
   0x6   :  { %v787_v13 = vld [vmem:[%s978_s0 + $0x44] ss:$8 sps:$4 sm:$0xff]   ;;  %306 = vmatprep.mubr.bf16.mxu0 %v781_v11  ;;  %v785_v19 = vld [vmem:[%s978_s0 + $0x40] ss:$8 sps:$4 sm:$0xff]   ;;  %v791_v21 = vld [vmem:[%s978_s0 + $0x54] ss:$8 sps:$4 sm:$0xff]  }
   0x7   :  { %685 = vmatpush3.bf16.msra.mxu0 %v766_v3  ;;  %755 = vmatpush3.bf16.msra.mxu1 %v766_v3  ;;  %v775_v14 = vld [vmem:[%s977_s1 + $0x48] sm:$0xff]   ;;  %v777_v16 = vld [vmem:[%s977_s1 + $0x40] sm:$0xff]   ;;  %v784_v22 = vld [vmem:[%s978_s0 + $0x10] ss:$8 sps:$4 sm:$0xff]  }
   0x8   :  { %686 = vmatprep.subr.bf16.mxu0 %v767_v4  ;;  %748 = vmatprep.subr.bf16.mxu1 %v767_v4  ;;  %v776_v15 = vld [vmem:[%s977_s1 + $0x8] sm:$0xff]   ;;  %v778_v17 = vld [vmem:[%s977_s1] sm:$0xff]   ;;  %v793_v23 = vld [vmem:[%s978_s0 + $0x50] ss:$8 sps:$4 sm:$0xff]  }
   0x9   :  { %338 = vmatprep.mubr.bf16.mxu1 %v787_v13  ;;  %v788_v24 = vld [vmem:[%s978_s0 + $0x24] ss:$8 sps:$4 sm:$0xff]   ;;  %v790_v26 = vld [vmem:[%s978_s0 + $0x20] ss:$8 sps:$4 sm:$0xff]   ;;  %v794_v28 = vld [vmem:[%s978_s0 + $0x34] ss:$8 sps:$4 sm:$0xff]  }
   0xa   :  { %v797_v25 = vld [vmem:[%s978_s0 + $0x64] ss:$8 sps:$4 sm:$0xff]   ;;  %v799_v27 = vld [vmem:[%s978_s0 + $0x60] ss:$8 sps:$4 sm:$0xff]   ;;  %v800_v29 = vld [vmem:[%s978_s0 + $0x74] ss:$8 sps:$4 sm:$0xff]  }
   0xb   :  { %687 = vmatpush3.bf16.msra.mxu0 %v768_v5  ;;  %756 = vmatpush3.bf16.msra.mxu1 %v768_v5  ;;  %v796_v30 = vld [vmem:[%s978_s0 + $0x30] ss:$8 sps:$4 sm:$0xff]  }
   0xc   :  { %688 = vmatprep.subr.bf16.mxu0 %v769_v6  ;;  %749 = vmatprep.subr.bf16.mxu1 %v769_v6  ;;  %v802_v31 = vld [vmem:[%s978_s0 + $0x70] ss:$8 sps:$4 sm:$0xff]  }
   0xf   :  { %689 = vmatpush3.bf16.msra.mxu0 %v770_v7  ;;  %757 = vmatpush3.bf16.msra.mxu1 %v770_v7 }
  0x10   :  { %690 = vmatprep.subr.bf16.mxu0 %v771_v8  ;;  %750 = vmatprep.subr.bf16.mxu1 %v771_v8 }
  0x13   :  { %691 = vmatpush3.bf16.msra.mxu0 %v772_v9  ;;  %758 = vmatpush3.bf16.msra.mxu1 %v772_v9 }
  0x14   :  { %692 = vmatprep.subr.bf16.mxu0 %v773_v10  ;;  %751 = vmatprep.subr.bf16.mxu1 %v773_v10 }
  0x17   :  { %693 = vmatpush3.bf16.msra.mxu0 %v774_v12  ;;  %759 = vmatpush3.bf16.msra.mxu1 %v774_v12 }
  0x18   :  { %694 = vmatprep.subr.bf16.mxu0 %v775_v14  ;;  %752 = vmatprep.subr.bf16.mxu1 %v775_v14 }
  0x1b   :  { %695 = vmatpush3.bf16.msra.mxu0 %v776_v15  ;;  %760 = vmatpush3.bf16.msra.mxu1 %v776_v15 }
  0x1c   :  { %696 = vmatprep.subr.bf16.mxu0 %v777_v16  ;;  %753 = vmatprep.subr.bf16.mxu1 %v777_v16 }
  0x1f   :  { %697 = vmatpush3.bf16.msra.mxu0 %v778_v17  ;;  %761 = vmatpush3.bf16.msra.mxu1 %v778_v17 }
  0x22   :  { %307 = vmatmul.mubr.bf16.vlgmr.msra.gmra.mxu0 %v779_v18  ;;  %339 = vmatmul.mubr.bf16.vlgmr.msra.gmra.mxu1 %v785_v19 }
  0x23   :  { %314 = vmatprep.mubr.bf16.mxu0 %v782_v20  ;;  %346 = vmatprep.mubr.bf16.mxu1 %v791_v21 }
  0x2a   :  { %315 = vmatmul.mubr.bf16.gmra.mxu0 %v784_v22  ;;  %347 = vmatmul.mubr.bf16.gmra.mxu1 %v793_v23 }
  0x2b   :  { %322 = vmatprep.mubr.bf16.mxu0 %v788_v24  ;;  %354 = vmatprep.mubr.bf16.mxu1 %v797_v25 }
  0x32   :  { %323 = vmatmul.mubr.bf16.gmra.mxu0 %v790_v26  ;;  %355 = vmatmul.mubr.bf16.gmra.mxu1 %v799_v27 }
  0x33   :  { %330 = vmatprep.mubr.bf16.mxu0 %v794_v28  ;;  %362 = vmatprep.mubr.bf16.mxu1 %v800_v29 }
  0x3a   :  { %331 = vmatmul.mubr.bf16.gmra.mxu0 %v796_v30  ;;  %363 = vmatmul.mubr.bf16.gmra.mxu1 %v802_v31 }
  0xe2   :  { %v698_v33 = vpop.f32.mrf.mxu0  ;;  %v722_v34 = vpop.f32.mrf.mxu1 }
  0xe4   :  { %v699_v35 = vpop.f32.mrf.mxu0  ;;  %v723_v36 = vpop.f32.mrf.mxu1 }
  0xe5   :  { %v923_v39 = vadd.f32 %v723_v36, %v722_v34  ;;  %v700_v42 = vadd.f32 %v699_v35, %v698_v33 }
  0xe6   :  { %v701_v37 = vpop.f32.mrf.mxu0  ;;  %v725_v38 = vpop.f32.mrf.mxu1 }
  0xe7   :  { %v525_v2 = vmul.f32 %v700_v42, %v700_v42 }
  0xe8   :  { %v702_v40 = vpop.f32.mrf.mxu0  ;;  %v726_v41 = vpop.f32.mrf.mxu1 }
  0xe9   :  { %v703_v43 = vadd.f32 %v702_v40, %v701_v37  ;;  %v925_v44 = vadd.f32 %v726_v41, %v725_v38 }
  0xea   :  { %v704_v45 = vpop.f32.mrf.mxu0  ;;  %v728_v46 = vpop.f32.mrf.mxu1 }
  0xeb   :  { %v638_v47 = vpack.c.bf16 %v703_v43, %v700_v42  ;;  %v658_v48 = vpack.c.bf16 %v925_v44, %v923_v39  ;;  %v526_v63 = vmul.f32 %v703_v43, %v703_v43  ;;  %v503_v7 = vadd.f32 %v703_v43, %v700_v42 }
  0xec   :  { %v705_v49 = vpop.f32.mrf.mxu0  ;;  %v729_v50 = vpop.f32.mrf.mxu1 }
  0xed   :  { %639 = vst [vmem:[%s980_s2] sm:$0xff] %v638_v47   ;;  %678 = vst [vmem:[%s980_s2 + $0x20] sm:$0xff] %v658_v48   ;;  %v935_v53 = vadd.f32 %v729_v50, %v728_v46  ;;  %v706_v56 = vadd.f32 %v705_v49, %v704_v45  ;;  %v541_v9 = vadd.f32 %v526_v63, %v525_v2 }
  0xee   :  { %v707_v51 = vpop.f32.mrf.mxu0  ;;  %v731_v52 = vpop.f32.mrf.mxu1  ;;  %v533_v48 = vmul.f32 %v923_v39, %v923_v39 }
  0xef   :  { %v527_v3 = vmul.f32 %v706_v56, %v706_v56  ;;  %v504_v13 = vadd.f32 %v706_v56, %v503_v7 }
  0xf0   :  { %v708_v54 = vpop.f32.mrf.mxu0  ;;  %v732_v55 = vpop.f32.mrf.mxu1 }
  0xf1   :  { %v709_v57 = vadd.f32 %v708_v54, %v707_v51  ;;  %v937_v58 = vadd.f32 %v732_v55, %v731_v52  ;;  %v542_v16 = vadd.f32 %v541_v9, %v527_v3  ;;  %v534_v51 = vmul.f32 %v925_v44, %v925_v44 }
  0xf2   :  { %v710_v59 = vpop.f32.mrf.mxu0  ;;  %v734_v60 = vpop.f32.mrf.mxu1  ;;  %v535_v55 = vmul.f32 %v935_v53, %v935_v53 }
  0xf3   :  { %v643_v61 = vpack.c.bf16 %v709_v57, %v706_v56  ;;  %v663_v62 = vpack.c.bf16 %v937_v58, %v935_v53  ;;  %v528_v10 = vmul.f32 %v709_v57, %v709_v57  ;;  %v505_v20 = vadd.f32 %v709_v57, %v504_v13 }
  0xf4   :  { %v711_v0 = vpop.f32.mrf.mxu0  ;;  %v735_v1 = vpop.f32.mrf.mxu1 }
  0xf5   :  { %675 = vst [vmem:[%s980_s2 + $0x8] sm:$0xff] %v643_v61   ;;  %679 = vst [vmem:[%s980_s2 + $0x28] sm:$0xff] %v663_v62   ;;  %v712_v4 = vadd.f32 %v711_v0, %v710_v59  ;;  %v736_v8 = vadd.f32 %v735_v1, %v734_v60  ;;  %v543_v23 = vadd.f32 %v542_v16, %v528_v10 }
  0xf6   :  { %v713_v5 = vpop.f32.mrf.mxu0  ;;  %v737_v6 = vpop.f32.mrf.mxu1 }
  0xf7   :  { %v529_v17 = vmul.f32 %v712_v4, %v712_v4  ;;  %v506_v27 = vadd.f32 %v712_v4, %v505_v20  ;;  %v537_v61 = vmul.f32 %v736_v8, %v736_v8 }
  0xf8   :  { %v714_v11 = vpop.f32.mrf.mxu0  ;;  %v738_v12 = vpop.f32.mrf.mxu1 }
  0xf9   :  { %v715_v14 = vadd.f32 %v714_v11, %v713_v5  ;;  %v739_v15 = vadd.f32 %v738_v12, %v737_v6  ;;  %v544_v29 = vadd.f32 %v543_v23, %v529_v17 }
  0xfa   :  { %v716_v18 = vpop.f32.mrf.mxu0  ;;  %v740_v19 = vpop.f32.mrf.mxu1 }
  0xfb   :  { %v648_v21 = vpack.c.bf16 %v715_v14, %v712_v4  ;;  %v668_v22 = vpack.c.bf16 %v739_v15, %v736_v8  ;;  %v530_v24 = vmul.f32 %v715_v14, %v715_v14  ;;  %v507_v32 = vadd.f32 %v715_v14, %v506_v27 }
  0xfc   :  { %v717_v25 = vpop.f32.mrf.mxu0  ;;  %v741_v26 = vpop.f32.mrf.mxu1  ;;  %v538_v1 = vmul.f32 %v739_v15, %v739_v15 }
  0xfd   :  { %676 = vst [vmem:[%s980_s2 + $0x10] sm:$0xff] %v648_v21   ;;  %v718_v28 = vadd.f32 %v717_v25, %v716_v18  ;;  %680 = vst [vmem:[%s980_s2 + $0x30] sm:$0xff] %v668_v22   ;;  %v742_v34 = vadd.f32 %v741_v26, %v740_v19  ;;  %v545_v35 = vadd.f32 %v544_v29, %v530_v24 }
  0xfe   :  { %v719_v30 = vpop.f32.mrf.mxu0  ;;  %v743_v31 = vpop.f32.mrf.mxu1 }
  0xff   :  { %v531_v33 = vmul.f32 %v718_v28, %v718_v28  ;;  %v508_v38 = vadd.f32 %v718_v28, %v507_v32  ;;  %v539_v4 = vmul.f32 %v742_v34, %v742_v34 }
 0x100   :  { %v720_v36 = vpop.f32.mrf.mxu0  ;;  %v744_v37 = vpop.f32.mrf.mxu1 }
 0x101   :  { %v721_v40 = vadd.f32 %v720_v36, %v719_v30  ;;  %v745_v41 = vadd.f32 %v744_v37, %v743_v31  ;;  %v546_v42 = vadd.f32 %v545_v35, %v531_v33 }
 0x103   :  { %v653_v43 = vpack.c.bf16 %v721_v40, %v718_v28  ;;  %v509_v45 = vadd.f32 %v721_v40, %v508_v38  ;;  %v532_v46 = vmul.f32 %v721_v40, %v721_v40  ;;  %v673_v47 = vpack.c.bf16 %v745_v41, %v742_v34 }
 0x104   :  { %v540_v7 = vmul.f32 %v745_v41, %v745_v41 }
 0x105   :  { %677 = vst [vmem:[%s980_s2 + $0x18] sm:$0xff] %v653_v43   ;;  %v510_v49 = vadd.f32 %v923_v39, %v509_v45  ;;  %v547_v50 = vadd.f32 %v546_v42, %v532_v46  ;;  %681 = vst [vmem:[%s980_s2 + $0x38] sm:$0xff] %v673_v47   ;;  %v536_v39 = vmul.f32 %v937_v58, %v937_v58 }
 0x107   :  { %v511_v52 = vadd.f32 %v925_v44, %v510_v49  ;;  %v548_v54 = vadd.f32 %v547_v50, %v533_v48 }
 0x109   :  { %v549_v56 = vadd.f32 %v548_v54, %v534_v51  ;;  %v512_v57 = vadd.f32 %v935_v53, %v511_v52 }
 0x10b   :  { %v513_v59 = vadd.f32 %v937_v58, %v512_v57  ;;  %v550_v60 = vadd.f32 %v549_v56, %v535_v55 }
 0x10d   :  { %v514_v62 = vadd.f32 %v736_v8, %v513_v59  ;;  %v551_v63 = vadd.f32 %v550_v60, %v536_v39 }
 0x10f   :  { %v515_v0 = vadd.f32 %v739_v15, %v514_v62  ;;  %v552_v2 = vadd.f32 %v551_v63, %v537_v61 }
 0x111   :  { %v553_v44 = vadd.f32 %v552_v2, %v538_v1  ;;  %v516_v3 = vadd.f32 %v742_v34, %v515_v0 }
 0x113   :  { %v554_v5 = vadd.f32 %v553_v44, %v539_v4  ;;  %v517_v6 = vadd.f32 %v745_v41, %v516_v3 }
 0x115   :  { %v518_v9 = vrot.slane %v517_v6, 4  ;;  %v555_v53 = vadd.f32 %v554_v5, %v540_v7 }
 0x117   :  { %v519_v10 = vadd.f32 %v518_v9, %v517_v6  ;;  %v556_v11 = vrot.slane %v555_v53, 4 }
 0x119   :  { %v520_v12 = vrot.slane %v519_v10, 2  ;;  %v557_v13 = vadd.f32 %v556_v11, %v555_v53 }
 0x11b   :  { %v521_v58 = vadd.f32 %v520_v12, %v519_v10  ;;  %v558_v14 = vrot.slane %v557_v13, 2 }
 0x11d   :  { %v522_v16 = vrot.slane %v521_v58, 1  ;;  %v559_v8 = vadd.f32 %v558_v14, %v557_v13 }
 0x11f   :  { %v523_v17 = vadd.f32 %v522_v16, %v521_v58  ;;  %v560_v18 = vrot.slane %v559_v8, 1 }
 0x121   :  { %524 = vst [vmem:[%s979_s3] sm:$0x1] %v523_v17  ;;  %v561_v15 = vadd.f32 %v560_v18, %v559_v8 }
 0x123   :  { %562 = vst [vmem:[%s979_s3 + $0x1] sm:$0x1] %v561_v15 }

// kernel: discriminator_forward.7
= control target key start
LH: loop header
LB: loop body
LE: loop exit
PB: predicated region body
PF: predicated region fallthrough
CT: control target
= control target key end

     0   :  { %v656_v40 = vmov 0.0   ;;  %s812_s1 = inlined_call_operand.vmem [shape: bf16[512,128], index: 1, kind: input, shape index: {}]   ;;  %s813_s0 = inlined_call_operand.vmem [shape: bf16[32,512], index: 0, kind: input, shape index: {}]   ;;  %s814_s3 = inlined_call_operand.vmem [shape: f32[8,128], index: 3, kind: output, shape index: {1}]   ;;  %s815_s2 = inlined_call_operand.vmem [shape: bf16[32,128], index: 2, kind: output, shape index: {0}]  }
   0x1   :  { %v612_v0 = vld [vmem:[%s812_s1 + $0x78] sm:$0xff]   ;;  %v616_v4 = vld [vmem:[%s812_s1 + $0x70] sm:$0xff]   ;;  %v620_v8 = vld [vmem:[%s812_s1 + $0x68] sm:$0xff]   ;;  %463 = vst [vmem:[%s814_s3] sm:$0xff] %v656_v40 }
   0x2   :  { %v613_v1 = vld [vmem:[%s812_s1 + $0xf8] sm:$0xff]   ;;  %555 = vmatprep.subr.bf16.mxu0 %v612_v0  ;;  %v617_v5 = vld [vmem:[%s812_s1 + $0xf0] sm:$0xff]   ;;  %v621_v9 = vld [vmem:[%s812_s1 + $0xe8] sm:$0xff]  }
   0x3   :  { %v614_v2 = vld [vmem:[%s812_s1 + $0x38] sm:$0xff]   ;;  %583 = vmatprep.subr.bf16.mxu1 %v613_v1  ;;  %v618_v6 = vld [vmem:[%s812_s1 + $0x30] sm:$0xff]   ;;  %v622_v10 = vld [vmem:[%s812_s1 + $0x28] sm:$0xff]  }
   0x4   :  { %v615_v3 = vld [vmem:[%s812_s1 + $0xb8] sm:$0xff]   ;;  %556 = vmatpush3.bf16.msra.mxu0 %v614_v2  ;;  %v619_v7 = vld [vmem:[%s812_s1 + $0xb0] sm:$0xff]   ;;  %v623_v11 = vld [vmem:[%s812_s1 + $0xa8] sm:$0xff]  }
   0x5   :  { %584 = vmatpush3.bf16.msra.mxu1 %v615_v3  ;;  %557 = vmatprep.subr.bf16.mxu0 %v616_v4  ;;  %v624_v12 = vld [vmem:[%s812_s1 + $0x60] sm:$0xff]   ;;  %v628_v16 = vld [vmem:[%s812_s1 + $0x58] sm:$0xff]   ;;  %v632_v20 = vld [vmem:[%s812_s1 + $0x50] sm:$0xff]  }
   0x6   :  { %585 = vmatprep.subr.bf16.mxu1 %v617_v5  ;;  %v625_v13 = vld [vmem:[%s812_s1 + $0xe0] sm:$0xff]   ;;  %v629_v17 = vld [vmem:[%s812_s1 + $0xd8] sm:$0xff]   ;;  %v633_v21 = vld [vmem:[%s812_s1 + $0xd0] sm:$0xff]  }
   0x7   :  { %v626_v14 = vld [vmem:[%s812_s1 + $0x20] sm:$0xff]   ;;  %v630_v18 = vld [vmem:[%s812_s1 + $0x18] sm:$0xff]   ;;  %v634_v22 = vld [vmem:[%s812_s1 + $0x10] sm:$0xff]  }
   0x8   :  { %558 = vmatpush3.bf16.msra.mxu0 %v618_v6  ;;  %v627_v15 = vld [vmem:[%s812_s1 + $0xa0] sm:$0xff]   ;;  %v631_v19 = vld [vmem:[%s812_s1 + $0x98] sm:$0xff]   ;;  %v635_v23 = vld [vmem:[%s812_s1 + $0x90] sm:$0xff]  }
   0x9   :  { %586 = vmatpush3.bf16.msra.mxu1 %v619_v7  ;;  %559 = vmatprep.subr.bf16.mxu0 %v620_v8  ;;  %v636_v24 = vld [vmem:[%s812_s1 + $0x48] sm:$0xff]   ;;  %v640_v28 = vld [vmem:[%s812_s1 + $0x40] sm:$0xff]  }
   0xa   :  { %587 = vmatprep.subr.bf16.mxu1 %v621_v9  ;;  %v637_v25 = vld [vmem:[%s812_s1 + $0xc8] sm:$0xff]   ;;  %v641_v29 = vld [vmem:[%s812_s1 + $0xc0] sm:$0xff]  }
   0xb   :  { %v638_v26 = vld [vmem:[%s812_s1 + $0x8] sm:$0xff]   ;;  %v642_v30 = vld [vmem:[%s812_s1] sm:$0xff]  }
   0xc   :  { %560 = vmatpush3.bf16.msra.mxu0 %v622_v10  ;;  %v639_v27 = vld [vmem:[%s812_s1 + $0x88] sm:$0xff]   ;;  %v643_v31 = vld [vmem:[%s812_s1 + $0x80] sm:$0xff]  }
   0xd   :  { %588 = vmatpush3.bf16.msra.mxu1 %v623_v11  ;;  %561 = vmatprep.subr.bf16.mxu0 %v624_v12  ;;  %v644_v32 = vld [vmem:[%s813_s0] ss:$16 sps:$4 sm:$0xff]   ;;  %v646_v33 = vld [vmem:[%s813_s0 + $0x4] ss:$16 sps:$4 sm:$0xff]   ;;  %v647_v34 = vld [vmem:[%s813_s0 + $0x8] ss:$16 sps:$4 sm:$0xff]  }
   0xe   :  { %589 = vmatprep.subr.bf16.mxu1 %v625_v13  ;;  %v649_v35 = vld [vmem:[%s813_s0 + $0xc] ss:$16 sps:$4 sm:$0xff]   ;;  %362 = vmatprep.mubr.bf16.mxu0 %v646_v33  ;;  %v650_v36 = vld [vmem:[%s813_s0 + $0x24] ss:$16 sps:$4 sm:$0xff]   ;;  %v654_v38 = vld [vmem:[%s813_s0 + $0x20] ss:$16 sps:$4 sm:$0xff]  }
   0xf   :  { %411 = vmatprep.mubr.bf16.mxu1 %v649_v35  ;;  %v652_v37 = vld [vmem:[%s813_s0 + $0x2c] ss:$16 sps:$4 sm:$0xff]   ;;  %v655_v39 = vld [vmem:[%s813_s0 + $0x28] ss:$16 sps:$4 sm:$0xff]  }
  0x10   :  { %562 = vmatpush3.bf16.msra.mxu0 %v626_v14 }
  0x11   :  { %590 = vmatpush3.bf16.msra.mxu1 %v627_v15  ;;  %563 = vmatprep.subr.bf16.mxu0 %v628_v16 }
  0x12   :  { %591 = vmatprep.subr.bf16.mxu1 %v629_v17 }
  0x14   :  { %564 = vmatpush3.bf16.msra.mxu0 %v630_v18 }
  0x15   :  { %592 = vmatpush3.bf16.msra.mxu1 %v631_v19  ;;  %565 = vmatprep.subr.bf16.mxu0 %v632_v20 }
  0x16   :  { %593 = vmatprep.subr.bf16.mxu1 %v633_v21 }
  0x18   :  { %566 = vmatpush3.bf16.msra.mxu0 %v634_v22 }
  0x19   :  { %594 = vmatpush3.bf16.msra.mxu1 %v635_v23  ;;  %567 = vmatprep.subr.bf16.mxu0 %v636_v24 }
  0x1a   :  { %595 = vmatprep.subr.bf16.mxu1 %v637_v25 }
  0x1c   :  { %568 = vmatpush3.bf16.msra.mxu0 %v638_v26 }
  0x1d   :  { %596 = vmatpush3.bf16.msra.mxu1 %v639_v27  ;;  %569 = vmatprep.subr.bf16.mxu0 %v640_v28 }
  0x1e   :  { %597 = vmatprep.subr.bf16.mxu1 %v641_v29 }
  0x20   :  { %570 = vmatpush3.bf16.msra.mxu0 %v642_v30 }
  0x21   :  { %598 = vmatpush3.bf16.msra.mxu1 %v643_v31 }
  0x23   :  { %363 = vmatmul.mubr.bf16.vlgmr.msra.gmra.mxu0 %v644_v32 }
  0x24   :  { %412 = vmatmul.mubr.bf16.vlgmr.msra.gmra.mxu1 %v647_v34  ;;  %370 = vmatprep.mubr.bf16.mxu0 %v650_v36 }
  0x25   :  { %419 = vmatprep.mubr.bf16.mxu1 %v652_v37 }
  0x2b   :  { %371 = vmatmul.mubr.bf16.gmra.mxu0 %v654_v38 }
  0x2c   :  { %420 = vmatmul.mubr.bf16.gmra.mxu1 %v655_v39 }
  0xe3   :  { %v571_v41 = vpop.f32.mrf.mxu0 }
  0xe4   :  { %v599_v42 = vpop.f32.mrf.mxu1 }
  0xe5   :  { %v572_v43 = vpop.f32.mrf.mxu0 }
  0xe6   :  { %v600_v44 = vpop.f32.mrf.mxu1  ;;  %v573_v47 = vadd.f32 %v572_v43, %v571_v41 }
  0xe7   :  { %v574_v45 = vpop.f32.mrf.mxu0  ;;  %v601_v48 = vadd.f32 %v600_v44, %v599_v42 }
  0xe8   :  { %v602_v46 = vpop.f32.mrf.mxu1 }
  0xe9   :  { %v575_v49 = vpop.f32.mrf.mxu0  ;;  %v414_v55 = vadd.f32 %v601_v48, %v573_v47 }
  0xea   :  { %v576_v50 = vadd.f32 %v575_v49, %v574_v45  ;;  %v603_v51 = vpop.f32.mrf.mxu1 }
  0xeb   :  { %v604_v52 = vadd.f32 %v603_v51, %v602_v46  ;;  %v577_v53 = vpop.f32.mrf.mxu0  ;;  %v474_v5 = vmul.f32 %v414_v55, %v414_v55 }
  0xec   :  { %v605_v54 = vpop.f32.mrf.mxu1 }
  0xed   :  { %v417_v56 = vadd.f32 %v604_v52, %v576_v50  ;;  %v578_v57 = vpop.f32.mrf.mxu0 }
  0xee   :  { %v579_v58 = vadd.f32 %v578_v57, %v577_v53  ;;  %v606_v59 = vpop.f32.mrf.mxu1 }
  0xef   :  { %v547_v60 = vpack.c.bf16 %v417_v56, %v414_v55  ;;  %v607_v61 = vadd.f32 %v606_v59, %v605_v54  ;;  %v580_v62 = vpop.f32.mrf.mxu0  ;;  %v475_v0 = vmul.f32 %v417_v56, %v417_v56  ;;  %v464_v6 = vadd.f32 %v417_v56, %v414_v55 }
  0xf0   :  { %v608_v63 = vpop.f32.mrf.mxu1 }
  0xf1   :  { %548 = vst [vmem:[%s815_s2] sm:$0xff] %v547_v60   ;;  %v422_v1 = vadd.f32 %v607_v61, %v579_v58  ;;  %v581_v2 = vpop.f32.mrf.mxu0  ;;  %v478_v9 = vadd.f32 %v475_v0, %v474_v5 }
  0xf2   :  { %v582_v3 = vadd.f32 %v581_v2, %v580_v62  ;;  %v609_v4 = vpop.f32.mrf.mxu1 }
  0xf3   :  { %v476_v7 = vmul.f32 %v422_v1, %v422_v1  ;;  %v610_v8 = vadd.f32 %v609_v4, %v608_v63  ;;  %v465_v10 = vadd.f32 %v464_v6, %v422_v1 }
  0xf5   :  { %v425_v11 = vadd.f32 %v610_v8, %v582_v3  ;;  %v479_v12 = vadd.f32 %v478_v9, %v476_v7 }
  0xf7   :  { %v552_v13 = vpack.c.bf16 %v425_v11, %v422_v1  ;;  %v466_v14 = vadd.f32 %v465_v10, %v425_v11  ;;  %v477_v15 = vmul.f32 %v425_v11, %v425_v11 }
  0xf9   :  { %554 = vst [vmem:[%s815_s2 + $0x8] sm:$0xff] %v552_v13   ;;  %v467_v16 = vrot.slane %v466_v14, 4  ;;  %v480_v17 = vadd.f32 %v479_v12, %v477_v15 }
  0xfb   :  { %v468_v18 = vadd.f32 %v467_v16, %v466_v14  ;;  %v481_v19 = vrot.slane %v480_v17, 4 }
  0xfd   :  { %v469_v20 = vrot.slane %v468_v18, 2  ;;  %v482_v21 = vadd.f32 %v481_v19, %v480_v17 }
  0xff   :  { %v470_v22 = vadd.f32 %v469_v20, %v468_v18  ;;  %v483_v23 = vrot.slane %v482_v21, 2 }
 0x101   :  { %v471_v24 = vrot.slane %v470_v22, 1  ;;  %v484_v25 = vadd.f32 %v483_v23, %v482_v21 }
 0x103   :  { %v472_v26 = vadd.f32 %v471_v24, %v470_v22  ;;  %v485_v27 = vrot.slane %v484_v25, 1 }
 0x105   :  { %473 = vst [vmem:[%s814_s3] sm:$0x1] %v472_v26  ;;  %v486_v28 = vadd.f32 %v485_v27, %v484_v25 }
 0x107   :  { %487 = vst [vmem:[%s814_s3 + $0x1] sm:$0x1] %v486_v28 }

</bundles_post_ra>
